<compile_context>
chip_gen: v6e
topology: v6e:2x2x1
jax: 0.10.0
libtpu: 0.0.40
codegen_flags: <defaults>
</compile_context>

<pallas_src>
import functools

import jax
import jax.numpy as jnp
from jax import lax
from jax.experimental import pallas as pl
from jax.experimental.pallas import tpu as pltpu


def _round_up(v, m):
    return ((v + m - 1) // m) * m


# ----------------------------------------------------------------------------
# Fused kernel: [conv-as-matmul + bias + ReLU] -> global-avg-pool -> Linear
# ----------------------------------------------------------------------------
def _fused_kernel(patches_ref, wconv_ref, bconv_ref, wln_ref, bln_ref,
                  o_ref, acc_ref, *, hw, thw):
    t = pl.program_id(1)

    @pl.when(t == 0)
    def _init():
        acc_ref[...] = jnp.zeros_like(acc_ref)

    # 3x3 conv on this HW tile as one MXU matmul (bf16 in, f32 accumulate).
    a = jnp.dot(patches_ref[0], wconv_ref[...],
                preferred_element_type=jnp.float32)            # (thw, F)
    a = jnp.maximum(a + bconv_ref[...], 0.0)                   # bias + ReLU (f32)

    if hw % thw != 0:
        # Mask rows that come from HW padding so they don't pollute the pool.
        row = t * thw + lax.broadcasted_iota(jnp.int32, (thw, 1), 0)
        a = jnp.where(row < hw, a, 0.0)

    # Global average pool, accumulated across HW tiles in VMEM.
    acc_ref[...] += jnp.sum(a, axis=0, keepdims=True)          # (1, F)

    @pl.when(t == pl.num_programs(1) - 1)
    def _finalize():
        pooled = acc_ref[...] * (1.0 / hw)                     # (1, F)
        out = jnp.dot(pooled, wln_ref[...],
                      preferred_element_type=jnp.float32) + bln_ref[...]
        o_ref[0] = out.astype(o_ref.dtype)                     # (1, N_pad), lane-dense


# ----------------------------------------------------------------------------
# Forward pass
# ----------------------------------------------------------------------------
def tactile_flow_encoder_forward(x, params, *, conv_dtype=jnp.bfloat16):
    """x: (B, 5, H, W) NCHW, as in the PyTorch module."""
    B, C, H, W = x.shape
    assert C == 5, "x[:, 2:-1] - x[:, 0:2] is only elementwise for C == 5"

    w_conv = params["w_conv"]            # (3, 3, 2, F)  HWIO
    b_conv = params["b_conv"]            # (1, F)
    w_ln = params["w_ln"]                # (F, out_dim)
    b_ln = params["b_ln"]                # (1, out_dim)
    F = w_conv.shape[-1]
    out_dim = w_ln.shape[-1]

    # Fold the temporal difference into the conv weights:
    #   conv(x[:,2:4] - x[:,0:2], w)  ==  conv(x[:,0:4], concat([-w, +w], cin))
    w_fold = jnp.concatenate([-w_conv, w_conv], axis=2)        # (3, 3, 4, F)
    w_mat = w_fold.reshape(9 * 4, F).astype(conv_dtype)        # (36, F)

    # im2col (3x3, stride 1, SAME) on the first 4 channels, NHWC.
    # TODO(synk): for camera-resolution frames build the 9 shifted slices inside
    # the kernel from halo'd NHWC tiles instead of materializing im2col in HBM.
    x4 = jnp.transpose(x[:, 0:4], (0, 2, 3, 1))                # (B, H, W, 4)
    xp = jnp.pad(x4, ((0, 0), (1, 1), (1, 1), (0, 0)))
    patches = jnp.stack(
        [xp[:, dy:dy + H, dx:dx + W, :] for dy in range(3) for dx in range(3)],
        axis=3,
    ).reshape(B, H * W, 36)                                    # pos-major, chan-minor

    HW = H * W
    thw = min(512, _round_up(HW, 16))                          # rows per grid step
    HW_pad = _round_up(HW, thw)
    n_hw = HW_pad // thw
    if HW_pad != HW:
        patches = jnp.pad(patches, ((0, 0), (0, HW_pad - HW), (0, 0)))
    patches = patches.astype(conv_dtype)

    # Pad the final Linear to 128 output lanes (unmasked stores), slice after.
    n_pad = _round_up(out_dim, 128)
    w_ln_p = jnp.pad(w_ln.astype(jnp.float32), ((0, 0), (0, n_pad - out_dim)))
    b_ln_p = jnp.pad(b_ln.astype(jnp.float32), ((0, 0), (0, n_pad - out_dim)))

    kernel = functools.partial(_fused_kernel, hw=HW, thw=thw)

    out = pl.pallas_call(
        kernel,
        out_shape=jax.ShapeDtypeStruct((B, 1, n_pad), jnp.float32),
        grid=(B, n_hw),
        in_specs=[
            pl.BlockSpec((1, thw, 36), lambda b, t: (b, t, 0)),   # im2col tile
            pl.BlockSpec((36, F), lambda b, t: (0, 0)),           # conv weight (resident)
            pl.BlockSpec((1, F), lambda b, t: (0, 0)),            # conv bias
            pl.BlockSpec((F, n_pad), lambda b, t: (0, 0)),        # linear weight
            pl.BlockSpec((1, n_pad), lambda b, t: (0, 0)),        # linear bias
        ],
        out_specs=pl.BlockSpec((1, 1, n_pad), lambda b, t: (b, 0, 0)),
        scratch_shapes=[pltpu.VMEM((1, F), jnp.float32)],         # pool accumulator
        compiler_params=pltpu.CompilerParams(
            dimension_semantics=("parallel", "arbitrary"),
        ),
    )(patches, w_mat, b_conv.astype(jnp.float32), w_ln_p, b_ln_p)

    return out.reshape(B, n_pad)[:, :out_dim]


# ----------------------------------------------------------------------------
# Pure-JAX reference (f32) for correctness check
# ----------------------------------------------------------------------------
def reference_forward(x, params):
    C = x.shape[1]
    diff = x[:, 2:C - 1, :, :] - x[:, 0:2, :, :]
    diff_nhwc = jnp.transpose(diff, (0, 2, 3, 1))
    conv = lax.conv_general_dilated(
        diff_nhwc, params["w_conv"],
        window_strides=(1, 1), padding="SAME",
        dimension_numbers=("NHWC", "HWIO", "NHWC"),
    ) + params["b_conv"].reshape(1, 1, 1, -1)
    conv = jnp.maximum(conv, 0.0)
    pooled = jnp.mean(conv, axis=(1, 2))                        # (B, 512)
    return pooled @ params["w_ln"] + params["b_ln"]


if __name__ == "__main__":
    B, C, H, W = 2, 5, 16, 16      # x[:, 2:-1] has 2 channels <=> C = 5
    out_dim = 32
    feat_dim = 512

    key = jax.random.PRNGKey(0)
    kx, k1, k2, k3, k4 = jax.random.split(key, 5)

    x = jax.random.normal(kx, (B, C, H, W), jnp.float32)

    params = {
        # conv weight in HWIO layout: (3, 3, Cin=2, Cout=512)
        "w_conv": jax.random.normal(k1, (3, 3, 2, feat_dim), jnp.float32) * 0.05,
        "b_conv": jax.random.normal(k2, (1, feat_dim), jnp.float32) * 0.01,
        # linear weight stored as (in, out) so forward is x @ w + b
        "w_ln": jax.random.normal(k3, (feat_dim, out_dim), jnp.float32) * 0.02,
        "b_ln": jax.random.normal(k4, (1, out_dim), jnp.float32) * 0.01,
    }

    ref = jax.block_until_ready(reference_forward(x, params))

    # f32 path: tight structural check of the fused kernel.
    out_f32 = jax.block_until_ready(
        tactile_flow_encoder_forward(x, params, conv_dtype=jnp.float32))
    assert out_f32.shape == (B, out_dim)
    assert jnp.allclose(out_f32, ref, atol=1e-3, rtol=1e-3)

    # bf16 MXU path (default): looser check (bf16 inputs, f32 accumulation).
    out = jax.block_until_ready(tactile_flow_encoder_forward(x, params))
    assert out.shape == (B, out_dim)
    assert jnp.allclose(out, ref, atol=2e-2, rtol=2e-2)

    print("KERNEL_OK")
</pallas_src>

<mosaic_0001>
module attributes {stable_mosaic.version = 11 : i64} {
  func.func @_fused_kernel(%arg0: i32, %arg1: i32, %arg2: memref<1x256x36xf32, #tpu.memory_space<vmem>>, %arg3: memref<36x512xf32, #tpu.memory_space<vmem>>, %arg4: memref<1x512xf32, #tpu.memory_space<vmem>>, %arg5: memref<512x128xf32, #tpu.memory_space<vmem>>, %arg6: memref<1x128xf32, #tpu.memory_space<vmem>>, %arg7: memref<1x1x128xf32, #tpu.memory_space<vmem>>, %arg8: memref<1x512xf32, #tpu.memory_space<vmem>>) attributes {dimension_semantics = [#tpu.dimension_semantics<parallel>, #tpu.dimension_semantics<arbitrary>], iteration_bounds = array<i64: 2, 1>, scalar_prefetch = 0 : i64, scratch_operands = 1 : i64, tpu.core_type = #tpu.core_type<tc>, window_params = [{transform_indices = @transform_0, window_bounds = array<i64: 1, 256, 36>}, {pipeline_mode = #tpu.pipeline_mode<synchronous>, transform_indices = @transform_1, window_bounds = array<i64: 36, 512>}, {pipeline_mode = #tpu.pipeline_mode<synchronous>, transform_indices = @transform_2, window_bounds = array<i64: 1, 512>}, {pipeline_mode = #tpu.pipeline_mode<synchronous>, transform_indices = @transform_3, window_bounds = array<i64: 512, 128>}, {pipeline_mode = #tpu.pipeline_mode<synchronous>, transform_indices = @transform_4, window_bounds = array<i64: 1, 128>}, {transform_indices = @transform_5, window_bounds = array<i64: 1, 1, 128>}]} {
    %c0_i32 = arith.constant 0 : i32
    %0 = arith.cmpi eq, %arg1, %c0_i32 : i32
    %1 = arith.extui %0 : i1 to i32
    %c0_i32_0 = arith.constant 0 : i32
    %2 = arith.cmpi ne, %1, %c0_i32_0 : i32
    scf.if %2 {
      %cst_15 = arith.constant 0.000000e+00 : f32
      %20 = vector.broadcast %cst_15 : f32 to vector<1x512xf32>
      %c0_16 = arith.constant 0 : index
      %c0_17 = arith.constant 0 : index
      %21 = vector.load %arg8[%c0_16, %c0_17] : memref<1x512xf32, #tpu.memory_space<vmem>>, vector<1x512xf32>
      tpu.vector_store %arg8[%c0_16, %c0_17], %20 {strides = array<i32>} : memref<1x512xf32, #tpu.memory_space<vmem>>, vector<1x512xf32>,
    } else {
    }
    %c0 = arith.constant 0 : index
    %c0_1 = arith.constant 0 : index
    %c0_2 = arith.constant 0 : index
    %3 = vector.load %arg2[%c0, %c0_1, %c0_2] : memref<1x256x36xf32, #tpu.memory_space<vmem>>, vector<1x256x36xf32>
    %4 = vector.shape_cast %3 : vector<1x256x36xf32> to vector<256x36xf32>
    %c0_3 = arith.constant 0 : index
    %c0_4 = arith.constant 0 : index
    %5 = vector.load %arg3[%c0_3, %c0_4] : memref<36x512xf32, #tpu.memory_space<vmem>>, vector<36x512xf32>
    %cst = arith.constant dense<0.000000e+00> : vector<256x512xf32>
    %6 = tpu.matmul %4, %5, %cst {dimension_numbers = #tpu.dot_dimension_numbers<[1], [0], [0], [1], [0, 0, 1, 1], [], []>} : vector<256x36xf32>, vector<36x512xf32>, vector<256x512xf32> -> vector<256x512xf32>
    %c0_5 = arith.constant 0 : index
    %c0_6 = arith.constant 0 : index
    %7 = vector.load %arg4[%c0_5, %c0_6] : memref<1x512xf32, #tpu.memory_space<vmem>>, vector<1x512xf32>
    %8 = vector.broadcast %7 : vector<1x512xf32> to vector<256x512xf32>
    %9 = arith.addf %6, %8 : vector<256x512xf32>
    %cst_7 = arith.constant 0.000000e+00 : f32
    %10 = vector.broadcast %cst_7 : f32 to vector<256x512xf32>
    %11 = arith.maximumf %9, %10 : vector<256x512xf32>
    %c0_8 = arith.constant 0 : index
    %c0_9 = arith.constant 0 : index
    %12 = vector.load %arg8[%c0_8, %c0_9] : memref<1x512xf32, #tpu.memory_space<vmem>>, vector<1x512xf32>
    %cst_10 = arith.constant dense<0.000000e+00> : vector<512xf32>
    %13 = vector.multi_reduction <add>, %11, %cst_10 [0] : vector<256x512xf32> to vector<512xf32>
    %14 = vector.shape_cast %13 : vector<512xf32> to vector<1x512xf32>
    %15 = arith.addf %12, %14 : vector<1x512xf32>
    %c0_11 = arith.constant 0 : index
    %c0_12 = arith.constant 0 : index
    %16 = vector.load %arg8[%c0_11, %c0_12] : memref<1x512xf32, #tpu.memory_space<vmem>>, vector<1x512xf32>
    tpu.vector_store %arg8[%c0_11, %c0_12], %15 {strides = array<i32>} : memref<1x512xf32, #tpu.memory_space<vmem>>, vector<1x512xf32>,
    %c0_i32_13 = arith.constant 0 : i32
    %17 = arith.cmpi eq, %arg1, %c0_i32_13 : i32
    %18 = arith.extui %17 : i1 to i32
    %c0_i32_14 = arith.constant 0 : i32
    %19 = arith.cmpi ne, %18, %c0_i32_14 : i32
    scf.if %19 {
      %c0_15 = arith.constant 0 : index
      %c0_16 = arith.constant 0 : index
      %20 = vector.load %arg8[%c0_15, %c0_16] : memref<1x512xf32, #tpu.memory_space<vmem>>, vector<1x512xf32>
      %cst_17 = arith.constant 3.906250e-03 : f32
      %21 = vector.broadcast %cst_17 : f32 to vector<1x512xf32>
      %22 = arith.mulf %20, %21 : vector<1x512xf32>
      %c0_18 = arith.constant 0 : index
      %c0_19 = arith.constant 0 : index
      %23 = vector.load %arg5[%c0_18, %c0_19] : memref<512x128xf32, #tpu.memory_space<vmem>>, vector<512x128xf32>
      %cst_20 = arith.constant dense<0.000000e+00> : vector<1x128xf32>
      %24 = tpu.matmul %22, %23, %cst_20 {dimension_numbers = #tpu.dot_dimension_numbers<[1], [0], [0], [1], [0, 0, 1, 1], [], []>} : vector<1x512xf32>, vector<512x128xf32>, vector<1x128xf32> -> vector<1x128xf32>
      %c0_21 = arith.constant 0 : index
      %c0_22 = arith.constant 0 : index
      %25 = vector.load %arg6[%c0_21, %c0_22] : memref<1x128xf32, #tpu.memory_space<vmem>>, vector<1x128xf32>
      %26 = arith.addf %24, %25 : vector<1x128xf32>
      %c0_23 = arith.constant 0 : index
      %c0_24 = arith.constant 0 : index
      %c0_25 = arith.constant 0 : index
      %27 = vector.load %arg7[%c0_23, %c0_24, %c0_25] : memref<1x1x128xf32, #tpu.memory_space<vmem>>, vector<1x1x128xf32>
      %28 = vector.shape_cast %27 : vector<1x1x128xf32> to vector<1x128xf32>
      %29 = vector.shape_cast %26 : vector<1x128xf32> to vector<1x1x128xf32>
      tpu.vector_store %arg7[%c0_23, %c0_24, %c0_25], %29 {strides = array<i32>} : memref<1x1x128xf32, #tpu.memory_space<vmem>>, vector<1x1x128xf32>,
    } else {
    }
    return
  }
  func.func @transform_0(%arg0: i32, %arg1: i32) -> (i32, i32, i32) {
    %c0_i32 = arith.constant 0 : i32
    %c0_i32_0 = arith.constant 0 : i32
    return %arg0, %arg1, %c0_i32 : i32, i32, i32
  }
  func.func @transform_1(%arg0: i32, %arg1: i32) -> (i32, i32) {
    %c0_i32 = arith.constant 0 : i32
    %c0_i32_0 = arith.constant 0 : i32
    %c0_i32_1 = arith.constant 0 : i32
    return %c0_i32, %c0_i32_0 : i32, i32
  }
  func.func @transform_2(%arg0: i32, %arg1: i32) -> (i32, i32) {
    %c0_i32 = arith.constant 0 : i32
    %c0_i32_0 = arith.constant 0 : i32
    %c0_i32_1 = arith.constant 0 : i32
    return %c0_i32, %c0_i32_0 : i32, i32
  }
  func.func @transform_3(%arg0: i32, %arg1: i32) -> (i32, i32) {
    %c0_i32 = arith.constant 0 : i32
    %c0_i32_0 = arith.constant 0 : i32
    %c0_i32_1 = arith.constant 0 : i32
    return %c0_i32, %c0_i32_0 : i32, i32
  }
  func.func @transform_4(%arg0: i32, %arg1: i32) -> (i32, i32) {
    %c0_i32 = arith.constant 0 : i32
    %c0_i32_0 = arith.constant 0 : i32
    %c0_i32_1 = arith.constant 0 : i32
    return %c0_i32, %c0_i32_0 : i32, i32
  }
  func.func @transform_5(%arg0: i32, %arg1: i32) -> (i32, i32, i32) {
    %c0_i32 = arith.constant 0 : i32
    %c0_i32_0 = arith.constant 0 : i32
    %c0_i32_1 = arith.constant 0 : i32
    return %arg0, %c0_i32, %c0_i32_0 : i32, i32, i32
  }
}

</mosaic_0001>

<bundles_post_ra>
// kernel: tpu_custom_call.1
= control target key start
LH: loop header
LB: loop body
LE: loop exit
PB: predicated region body
PF: predicated region fallthrough
CT: control target
= control target key end

     0   :  { %10 = vsyncpa [#allocation4], 0  ;;  %s2824_s0 = inlined_call_operand.vmem [shape: f32[2,256,36], index: 0, kind: input, shape index: {}]   ;;  %s2825_s1 = inlined_call_operand.hbm [shape: f32[36,512], index: 1, kind: input, shape index: {}]   ;;  %s2826_s2 = inlined_call_operand.vmem [shape: f32[1,512], index: 2, kind: input, shape index: {}]   ;;  %s2827_s3 = inlined_call_operand.vmem [shape: f32[512,128], index: 3, kind: input, shape index: {}]   ;;  %s2828_s4 = inlined_call_operand.vmem [shape: f32[1,128], index: 4, kind: input, shape index: {}]   ;;  %s2829_s5 = inlined_call_operand.hbm [shape: f32[2,1,128], index: 5, kind: output, shape index: {}]  }
   0x1   :  { %11 = vsyncpa [#allocation5], 0 }
   0x2   :  { %13 = vsyncpa [#allocation5 + $0x1], 0  ;;  %s1975_s18 = smov 0   ;;  %s1977_s19 = smov 0  }
   0x3   :  { %s1979_s20 = smov 0   ;;  %s1981_s21 = smov 0  }
   0x4   :  { %s1983_s22 = smov 0   ;;  %s1985_s23 = smov 0  }
   0x5 LB: > { %s1610_s24 = sadd.s32 4294967295, %s1937_s23   ;;  %s1611_s25 = sadd.s32 4294967294, %s1937_s23   ;;  %s1937_s23 = sphi %s1985_s23, %s19_s23   ;;  %s1933_s22 = sphi %s1983_s22, %s2842_s22   ;;  %s1929_s21 = sphi %s1981_s21, %s2841_s21   ;;  %s1925_s20 = sphi %s1979_s20, %s2840_s20   ;;  %s1921_s19 = sphi %s1977_s19, %s2839_s19   ;;  %s1917_s18 = sphi %s1975_s18, %s2838_s18  }
   0x6   : > { %s31_s26 = sadd.s32 1, %s1933_s22  ;;  %s150_s27 = sadd.s32 1, %s1925_s20 }
   0x7   : > { %p33_p0 = scmp.ge.s32.totalorder %s31_s26, 2  ;;  %p160_p1 = scmp.ne.s32.totalorder %s1925_s20, %s1921_s19 }
   0x8   : > { %p161_p2 = scmp.eq.s32.totalorder %s1610_s24, 1  ;;  %p166_p3 = scmp.ne.s32.totalorder %s1921_s19, %s1917_s18 }
   0x9   : > { %s2844_s26 = smov (%p33_p0, %s31_s26), 0  ;;  %p167_p5 = scmp.eq.s32.totalorder %s1611_s25, 1 }
   0xa   : > { %p2015_p4 = por %p161_p2, %p160_p1  ;;  %s147_s29 = ssub.s32 %s1933_s22, %s2844_s26 }
   0xb   : > { %p1612_p6 = scmp.ge.s32.totalorder %s1937_s23, 1  ;;  %p148_p7 = scmp.eq.s32.totalorder %s147_s29, 0 }
   0xc   : > { %p2022_p8 = por %p167_p5, %p166_p3  ;;  %p174_p9 = scmp.lt.s32.totalorder %s1937_s23, 3 }
   0xd   : > { %s2028_s6 = scalar_select %p148_p7, %s1925_s20, %s150_s27  }
   0xe   : > { %p2030_p10 = pnand %p1612_p6, %p174_p9  ;;  %p2034_p11 = scmp.eq.s32.totalorder %s1610_s24, 0 }
   0xf   : > { %s1939_s9 = smov [#allocation3]  }
  0x10   : > { %p1767_p12 = pneg %p2030_p10  ;;  %s186_s10 = sshll.u32 %s1939_s9, 4  ;;  %s187_s10 = int_to_ptr.vmem [resolvable:$true] %s186_s10 }
  0x11   : > { %s1842_s11 = scalar_lea.vmem %s187_s10, 2560  ;;  %p1850_p5 = scmp.lt.s32.totalorder %s187_s10, %s187_s10 }
  0x12   : > { %p1768_p13 = pnand %p2034_p11, %p1767_p12  ;;  %p1843_p1 = scmp.ne.s32.totalorder %s187_s10, %s1842_s11 }
  0x13   : > { %p1851_p6 = scmp.lt.s32.totalorder %s1842_s11, %s1842_s11 }
  0x14   : > { %p1833_p0 = pneg %p1768_p13 }
  0x15   : > { %p1852_p7 = por %p1851_p6, %p1850_p5 }
  0x16   : > { %p1845_p2 = pnand %p1843_p1, %p1833_p0 }
  0x18   : > { %p1846_p3 = pneg %p1845_p2 }
  0x1a   : > { %p1853_p9 = pnand %p1852_p7, %p1846_p3 }
  0x1c   : > { %1856 = shalt.err (!%p1853_p9)
}
  0x1d   : > { %s1940_s12 = smov 512   ;;  %s1941_s13 = smov 32  }
  0x1e   : > { %1770 = dma.hbm_to_vmem [thread:$0]  (!%p1768_p13), %s2825_s1, 2560, %s187_s10, [#allocation4], %s1940_s12, %s1940_s12, %s1941_s13  }
  0x1f   : > { %224 = sbr.rel (%p2030_p10) target bundleno = 623 (0x26f), region = 40 }
  0x24   : > { %1908 = dma.done.wait (%p2034_p11), [#allocation4], 2560  }
  0x25   : > { %1910 = vsyncadd (%p2034_p11), [#allocation4], 4294964736  ;;  %v1942_v0 = vmov 0.0   ;;  %p256_p12 = scmp.lt.s32.totalorder %s1929_s21, 1  ;;  %vm445_vm0 = vcmask 1043456   ;;  %v319_v5 = vld [vmem:[#allocation3 + $0x68] sm:$0xff] }
  0x26   : > { %522 = vmatprep.mubr.f32.mxu0 %v1942_v0  ;;  %779 = vmatprep.mubr.f32.mxu1 %v1942_v0  ;;  %v323_v1 = vld [vmem:[#allocation3 + $0x88] sm:$0xf]  ;;  %v325_v2 = vld [vmem:[#allocation3 + $0x98] sm:$0xf]  ;;  %v322_v3 = vld [vmem:[#allocation3 + $0x80] sm:$0xf] }
  0x27   : > { %s2055_s16 = scalar_select %p256_p12, %s1929_s21, 1  ;;  %1619 = vmatprep.subr.msk.mxu0 %vm445_vm0, %v323_v1  ;;  %1653 = vmatprep.subr.msk.mxu1 %vm445_vm0, %v325_v2  ;;  %v324_v4 = vld [vmem:[#allocation3 + $0x90] sm:$0xf]  ;;  %v321_v6 = vld [vmem:[#allocation3 + $0x78] sm:$0xff]  ;;  %v318_v7 = vld [vmem:[#allocation3 + $0x60] sm:$0xff]  ;;  %vm348_vm1 = vcmask 293888  }
  0x28   : > { %1620 = vmatpush1.msk.msra.mxu0 %vm445_vm0, %v322_v3  ;;  %1654 = vmatpush1.msk.msra.mxu1 %vm445_vm0, %v324_v4  ;;  %v320_v8 = vld [vmem:[#allocation3 + $0x70] sm:$0xff]  ;;  %v315_v9 = vld [vmem:[#allocation3 + $0x48] sm:$0xff]  ;;  %v317_v10 = vld [vmem:[#allocation3 + $0x58] sm:$0xff]  ;;  %s1687_s25 = sshll.u32 %s1929_s21, 4  ;;  %s1944_s13 = smov [#allocation6]  }
  0x29   : > { %s1690_s17 = sshll.u32 %s2055_s16, 8  ;;  %482 = vmatprep.subr.mxu0 %v319_v5  ;;  %739 = vmatprep.subr.mxu1 %v321_v6  ;;  %v314_v11 = vld [vmem:[#allocation3 + $0x40] sm:$0xff]  ;;  %v316_v12 = vld [vmem:[#allocation3 + $0x50] sm:$0xff]  ;;  %v311_v13 = vld [vmem:[#allocation3 + $0x28] sm:$0xff]  ;;  %s253_s16 = sand.u32 1, %s1921_s19  }
  0x2a   : > { %483 = vmatpush1.msra.mxu0 %v318_v7  ;;  %740 = vmatpush1.msra.mxu1 %v320_v8  ;;  %v313_v14 = vld [vmem:[#allocation3 + $0x38] sm:$0xff]  ;;  %v310_v15 = vld [vmem:[#allocation3 + $0x20] sm:$0xff]  ;;  %v312_v16 = vld [vmem:[#allocation3 + $0x30] sm:$0xff]  ;;  %s2061_s27 = scalar_lea.vmem %s2824_s0, %s1690_s17  ;;  %s254_s29 = scalar_lea.vmem [#allocation6], %s253_s16 }
  0x2b   : > { %484 = vmatprep.subr.mxu0 %v315_v9  ;;  %741 = vmatprep.subr.mxu1 %v317_v10  ;;  %v307_v17 = vld [vmem:[#allocation3 + $0x8] sm:$0xff]  ;;  %v309_v18 = vld [vmem:[#allocation3 + $0x18] sm:$0xff]  ;;  %v306_v19 = vld [vmem:[#allocation3] sm:$0xff]  ;;  %s1529_s7 = sshll.u32 %s254_s29, 4  ;;  %s1527_s10 = scalar_lea.hbm %s2829_s5, %s1687_s25  ;;  %s1530_s7 = int_to_ptr.vmem [resolvable:$true] %s1529_s7 }
  0x2c   : > { %485 = vmatpush1.msra.mxu0 %v314_v11  ;;  %742 = vmatpush1.msra.mxu1 %v316_v12  ;;  %v308_v20 = vld [vmem:[#allocation3 + $0x10] sm:$0xff]  ;;  %v274_v21 = vld [vmem:[%s2061_s27] sm:$0xff]  ;;  %v275_v22 = vld [vmem:[%s2061_s27 + $0x8] sm:$0xff]  ;;  %s1517_s11 = scalar_lea.sflag [#allocation5], %s253_s16  ;;  %s1857_s12 = scalar_lea.vmem %s1530_s7, 16 }
  0x2d   : > { %486 = vmatprep.subr.mxu0 %v311_v13  ;;  %743 = vmatprep.subr.mxu1 %v313_v14  ;;  %v276_v23 = vld [vmem:[%s2061_s27 + $0x10] sm:$0xff]  ;;  %v277_v24 = vld [vmem:[%s2061_s27 + $0x18] sm:$0xff]  ;;  %v278_v25 = vld [vmem:[%s2061_s27 + $0x20] sm:$0xff]  ;;  %p1858_p10 = scmp.ne.s32.totalorder %s1530_s7, %s1857_s12 }
  0x2e   : > { %487 = vmatpush1.msra.mxu0 %v310_v15  ;;  %744 = vmatpush1.msra.mxu1 %v312_v16  ;;  %v279_v26 = vld [vmem:[%s2061_s27 + $0x28] sm:$0xff]  ;;  %v280_v27 = vld [vmem:[%s2061_s27 + $0x30] sm:$0xff]  ;;  %v281_v28 = vld [vmem:[%s2061_s27 + $0x38] sm:$0xff] }
  0x2f   : > { %488 = vmatprep.subr.mxu0 %v307_v17  ;;  %745 = vmatprep.subr.mxu1 %v309_v18  ;;  %v282_v29 = vld [vmem:[%s2061_s27 + $0x40] sm:$0xff]  ;;  %v283_v30 = vld [vmem:[%s2061_s27 + $0x48] sm:$0xff]  ;;  %v284_v31 = vld [vmem:[%s2061_s27 + $0x50] sm:$0xff]  ;;  %p1859_p11 = pnand %p1858_p10, %p2015_p4 }
  0x30   : > { %489 = vmatpush1.msra.mxu0 %v306_v19  ;;  %746 = vmatpush1.msra.mxu1 %v308_v20  ;;  %v285_v32 = vld [vmem:[%s2061_s27 + $0x58] sm:$0xff]  ;;  %v286_v33 = vld [vmem:[%s2061_s27 + $0x60] sm:$0xff]  ;;  %v287_v34 = vld [vmem:[%s2061_s27 + $0x68] sm:$0xff] }
  0x31   : > { %1621 = vmatmul.mubr.msk.f32.vlgmr.msra.gmra.mxu0 %vm348_vm1, %v274_v21  ;;  %1655 = vmatmul.mubr.msk.f32.vlgmr.msra.gmra.mxu1 %vm348_vm1, %v274_v21  ;;  %v288_v35 = vld [vmem:[%s2061_s27 + $0x70] sm:$0xff]  ;;  %v289_v36 = vld [vmem:[%s2061_s27 + $0x78] sm:$0xff]  ;;  %v290_v37 = vld [vmem:[%s2061_s27 + $0x80] sm:$0xff]  ;;  %p1860_p13 = pneg %p1859_p11 }
  0x32   : > { %528 = vmatprep.mubr.f32.mxu0 %v1942_v0  ;;  %785 = vmatprep.mubr.f32.mxu1 %v1942_v0  ;;  %v291_v38 = vld [vmem:[%s2061_s27 + $0x88] sm:$0xff]  ;;  %v292_v39 = vld [vmem:[%s2061_s27 + $0x90] sm:$0xff]  ;;  %v293_v40 = vld [vmem:[%s2061_s27 + $0x98] sm:$0xff] }
  0x33   : > { %v294_v41 = vld [vmem:[%s2061_s27 + $0xa0] sm:$0xff]  ;;  %v295_v42 = vld [vmem:[%s2061_s27 + $0xa8] sm:$0xff]  ;;  %v296_v43 = vld [vmem:[%s2061_s27 + $0xb0] sm:$0xff] }
  0x34   : > { %v297_v44 = vld [vmem:[%s2061_s27 + $0xb8] sm:$0xff]  ;;  %v298_v45 = vld [vmem:[%s2061_s27 + $0xc0] sm:$0xff]  ;;  %v299_v46 = vld [vmem:[%s2061_s27 + $0xc8] sm:$0xff] }
  0x35   : > { %1622 = vmatmul.mubr.msk.f32.gmra.mxu0 %vm348_vm1, %v275_v22  ;;  %1656 = vmatmul.mubr.msk.f32.gmra.mxu1 %vm348_vm1, %v275_v22  ;;  %v300_v47 = vld [vmem:[%s2061_s27 + $0xd0] sm:$0xff]  ;;  %v301_v48 = vld [vmem:[%s2061_s27 + $0xd8] sm:$0xff]  ;;  %v302_v50 = vld [vmem:[%s2061_s27 + $0xe0] sm:$0xff] }
  0x36   : > { %534 = vmatprep.mubr.f32.mxu0 %v1942_v0  ;;  %791 = vmatprep.mubr.f32.mxu1 %v1942_v0  ;;  %v1320_v49 = vld [vmem:[%s2827_s3 + $0xf8] sm:$0xff]  ;;  %v303_v54 = vld [vmem:[%s2061_s27 + $0xe8] sm:$0xff]  ;;  %v1319_v55 = vld [vmem:[%s2827_s3 + $0xf0] sm:$0xff] }
  0x37   : > { %v1304_v51 = vld [vmem:[%s2827_s3 + $0x78] sm:$0xff]  ;;  %1691 = vmatprep.subr.mxu0 %v1320_v49  ;;  %v304_v56 = vld [vmem:[%s2061_s27 + $0xf0] sm:$0xff]  ;;  %v1318_v61 = vld [vmem:[%s2827_s3 + $0xe8] sm:$0xff] }
  0x38   : > { %v1352_v52 = vld [vmem:[%s2827_s3 + $0x1f8] sm:$0xff]  ;;  %1692 = vmatpush3.msra.mxu0 %v1304_v51  ;;  %v1303_v57 = vld [vmem:[%s2827_s3 + $0x70] sm:$0xff]  ;;  %v1302_v62 = vld [vmem:[%s2827_s3 + $0x68] sm:$0xff] }
  0x39   : > { %1623 = vmatmul.mubr.msk.f32.gmra.mxu0 %vm348_vm1, %v276_v23  ;;  %1657 = vmatmul.mubr.msk.f32.gmra.mxu1 %vm348_vm1, %v276_v23  ;;  %v1336_v53 = vld [vmem:[%s2827_s3 + $0x178] sm:$0xff]  ;;  %v1351_v58 = vld [vmem:[%s2827_s3 + $0x1f0] sm:$0xff]  ;;  %v1350_v63 = vld [vmem:[%s2827_s3 + $0x1e8] sm:$0xff] }
  0x3a   : > { %540 = vmatprep.mubr.f32.mxu0 %v1942_v0  ;;  %797 = vmatprep.mubr.f32.mxu1 %v1942_v0  ;;  %v1335_v59 = vld [vmem:[%s2827_s3 + $0x170] sm:$0xff]  ;;  %v305_v60 = vld [vmem:[%s2061_s27 + $0xf8] sm:$0xff]  ;;  %v1334_v1 = vld [vmem:[%s2827_s3 + $0x168] sm:$0xff]  ;;  %s1861_s27 = sshll.u32 %s1944_s13, 4  ;;  %s1862_s27 = int_to_ptr.vmem [resolvable:$false] %s1861_s27 }
  0x3b   : > { %1726 = vmatprep.subr.mxu1 %v1352_v52  ;;  %1693 = vmatprep.subr.mxu0 %v1319_v55  ;;  %v1317_v2 = vld [vmem:[%s2827_s3 + $0xe0] sm:$0xff]  ;;  %v1316_v6 = vld [vmem:[%s2827_s3 + $0xd8] sm:$0xff]  ;;  %v1315_v10 = vld [vmem:[%s2827_s3 + $0xd0] sm:$0xff]  ;;  %s1863_s21 = scalar_lea.vmem %s1862_s27, 32  ;;  %p1864_p0 = scmp.lt.s32.totalorder %s1530_s7, %s1862_s27 }
  0x3c   : > { %1727 = vmatpush3.msra.mxu1 %v1336_v53  ;;  %1694 = vmatpush3.msra.mxu0 %v1303_v57  ;;  %v1301_v3 = vld [vmem:[%s2827_s3 + $0x60] sm:$0xff]  ;;  %v1300_v7 = vld [vmem:[%s2827_s3 + $0x58] sm:$0xff]  ;;  %v1299_v11 = vld [vmem:[%s2827_s3 + $0x50] sm:$0xff]  ;;  %p1865_p1 = scmp.lt.s32.totalorder %s1863_s21, %s1857_s12 }
  0x3d   : > { %1624 = vmatmul.mubr.msk.f32.gmra.mxu0 %vm348_vm1, %v277_v24  ;;  %1658 = vmatmul.mubr.msk.f32.gmra.mxu1 %vm348_vm1, %v277_v24  ;;  %v1349_v4 = vld [vmem:[%s2827_s3 + $0x1e0] sm:$0xff]  ;;  %v1348_v8 = vld [vmem:[%s2827_s3 + $0x1d8] sm:$0xff]  ;;  %v1347_v12 = vld [vmem:[%s2827_s3 + $0x1d0] sm:$0xff] }
  0x3e   : > { %546 = vmatprep.mubr.f32.mxu0 %v1942_v0  ;;  %803 = vmatprep.mubr.f32.mxu1 %v1942_v0  ;;  %v1333_v5 = vld [vmem:[%s2827_s3 + $0x160] sm:$0xff]  ;;  %v1332_v9 = vld [vmem:[%s2827_s3 + $0x158] sm:$0xff]  ;;  %v1331_v13 = vld [vmem:[%s2827_s3 + $0x150] sm:$0xff]  ;;  %p1866_p2 = por %p1865_p1, %p1864_p0 }
  0x3f   : > { %1728 = vmatprep.subr.mxu1 %v1351_v58  ;;  %1695 = vmatprep.subr.mxu0 %v1318_v61  ;;  %v1314_v14 = vld [vmem:[%s2827_s3 + $0xc8] sm:$0xff]  ;;  %v1313_v18 = vld [vmem:[%s2827_s3 + $0xc0] sm:$0xff]  ;;  %v1312_v22 = vld [vmem:[%s2827_s3 + $0xb8] sm:$0xff] }
  0x40   : > { %1729 = vmatpush3.msra.mxu1 %v1335_v59  ;;  %1696 = vmatpush3.msra.mxu0 %v1302_v62  ;;  %v1298_v15 = vld [vmem:[%s2827_s3 + $0x48] sm:$0xff]  ;;  %v1297_v19 = vld [vmem:[%s2827_s3 + $0x40] sm:$0xff]  ;;  %v1296_v23 = vld [vmem:[%s2827_s3 + $0x38] sm:$0xff]  ;;  %p1867_p3 = pnand %p1866_p2, %p1860_p13 }
  0x41   : > { %1625 = vmatmul.mubr.msk.f32.gmra.mxu0 %vm348_vm1, %v278_v25  ;;  %1659 = vmatmul.mubr.msk.f32.gmra.mxu1 %vm348_vm1, %v278_v25  ;;  %v1346_v16 = vld [vmem:[%s2827_s3 + $0x1c8] sm:$0xff]  ;;  %v1345_v20 = vld [vmem:[%s2827_s3 + $0x1c0] sm:$0xff]  ;;  %v1344_v24 = vld [vmem:[%s2827_s3 + $0x1b8] sm:$0xff] }
  0x42   : > { %552 = vmatprep.mubr.f32.mxu0 %v1942_v0  ;;  %809 = vmatprep.mubr.f32.mxu1 %v1942_v0  ;;  %v1330_v17 = vld [vmem:[%s2827_s3 + $0x148] sm:$0xff]  ;;  %v1329_v21 = vld [vmem:[%s2827_s3 + $0x140] sm:$0xff]  ;;  %v1328_v25 = vld [vmem:[%s2827_s3 + $0x138] sm:$0xff] }
  0x43   : > { %1730 = vmatprep.subr.mxu1 %v1350_v63  ;;  %1697 = vmatprep.subr.mxu0 %v1317_v2 }
  0x44   : > { %1731 = vmatpush3.msra.mxu1 %v1334_v1  ;;  %1698 = vmatpush3.msra.mxu0 %v1301_v3 }
  0x45   : > { %1626 = vmatmul.mubr.msk.f32.gmra.mxu0 %vm348_vm1, %v279_v26  ;;  %1660 = vmatmul.mubr.msk.f32.gmra.mxu1 %vm348_vm1, %v279_v26  ;;  %v1311_v26 = vld [vmem:[%s2827_s3 + $0xb0] sm:$0xff] }
  0x46   : > { %558 = vmatprep.mubr.f32.mxu0 %v1942_v0  ;;  %815 = vmatprep.mubr.f32.mxu1 %v1942_v0 }
  0x47   : > { %1732 = vmatprep.subr.mxu1 %v1349_v4  ;;  %1699 = vmatprep.subr.mxu0 %v1316_v6  ;;  %v1309_v6 = vld [vmem:[%s2827_s3 + $0xa0] sm:$0xff] }
  0x48   : > { %1733 = vmatpush3.msra.mxu1 %v1333_v5  ;;  %1700 = vmatpush3.msra.mxu0 %v1300_v7  ;;  %v1293_v7 = vld [vmem:[%s2827_s3 + $0x20] sm:$0xff] }
  0x49   : > { %1627 = vmatmul.mubr.msk.f32.gmra.mxu0 %vm348_vm1, %v280_v27  ;;  %1661 = vmatmul.mubr.msk.f32.gmra.mxu1 %vm348_vm1, %v280_v27  ;;  %v1295_v27 = vld [vmem:[%s2827_s3 + $0x30] sm:$0xff] }
  0x4a   : > { %564 = vmatprep.mubr.f32.mxu0 %v1942_v0  ;;  %821 = vmatprep.mubr.f32.mxu1 %v1942_v0 }
  0x4b   : > { %1734 = vmatprep.subr.mxu1 %v1348_v8  ;;  %1701 = vmatprep.subr.mxu0 %v1315_v10  ;;  %v1341_v8 = vld [vmem:[%s2827_s3 + $0x1a0] sm:$0xff] }
  0x4c   : > { %1735 = vmatpush3.msra.mxu1 %v1332_v9  ;;  %1702 = vmatpush3.msra.mxu0 %v1299_v11  ;;  %v1325_v11 = vld [vmem:[%s2827_s3 + $0x120] sm:$0xff] }
  0x4d   : > { %1628 = vmatmul.mubr.msk.f32.gmra.mxu0 %vm348_vm1, %v281_v28  ;;  %1662 = vmatmul.mubr.msk.f32.gmra.mxu1 %vm348_vm1, %v281_v28  ;;  %v1343_v28 = vld [vmem:[%s2827_s3 + $0x1b0] sm:$0xff] }
  0x4e   : > { %570 = vmatprep.mubr.f32.mxu0 %v1942_v0  ;;  %827 = vmatprep.mubr.f32.mxu1 %v1942_v0 }
  0x4f   : > { %1736 = vmatprep.subr.mxu1 %v1347_v12  ;;  %1703 = vmatprep.subr.mxu0 %v1314_v14  ;;  %v1308_v12 = vld [vmem:[%s2827_s3 + $0x98] sm:$0xff] }
  0x50   : > { %1737 = vmatpush3.msra.mxu1 %v1331_v13  ;;  %1704 = vmatpush3.msra.mxu0 %v1298_v15  ;;  %v1292_v13 = vld [vmem:[%s2827_s3 + $0x18] sm:$0xff] }
  0x51   : > { %1629 = vmatmul.mubr.msk.f32.gmra.mxu0 %vm348_vm1, %v282_v29  ;;  %1663 = vmatmul.mubr.msk.f32.gmra.mxu1 %vm348_vm1, %v282_v29  ;;  %v1327_v29 = vld [vmem:[%s2827_s3 + $0x130] sm:$0xff]  ;;  %v1340_v15 = vld [vmem:[%s2827_s3 + $0x198] sm:$0xff] }
  0x52   : > { %576 = vmatprep.mubr.f32.mxu0 %v1942_v0  ;;  %833 = vmatprep.mubr.f32.mxu1 %v1942_v0 }
  0x53   : > { %1738 = vmatprep.subr.mxu1 %v1346_v16  ;;  %1705 = vmatprep.subr.mxu0 %v1313_v18  ;;  %v1324_v16 = vld [vmem:[%s2827_s3 + $0x118] sm:$0xff] }
  0x54   : > { %1739 = vmatpush3.msra.mxu1 %v1330_v17  ;;  %1706 = vmatpush3.msra.mxu0 %v1297_v19  ;;  %v1307_v17 = vld [vmem:[%s2827_s3 + $0x90] sm:$0xff] }
  0x55   : > { %1630 = vmatmul.mubr.msk.f32.gmra.mxu0 %vm348_vm1, %v283_v30  ;;  %1664 = vmatmul.mubr.msk.f32.gmra.mxu1 %vm348_vm1, %v283_v30  ;;  %v1310_v30 = vld [vmem:[%s2827_s3 + $0xa8] sm:$0xff] }
  0x56   : > { %582 = vmatprep.mubr.f32.mxu0 %v1942_v0  ;;  %839 = vmatprep.mubr.f32.mxu1 %v1942_v0 }
  0x57   : > { %1740 = vmatprep.subr.mxu1 %v1345_v20  ;;  %1707 = vmatprep.subr.mxu0 %v1312_v22  ;;  %v1339_v22 = vld [vmem:[%s2827_s3 + $0x190] sm:$0xff] }
  0x58   : > { %1741 = vmatpush3.msra.mxu1 %v1329_v21  ;;  %1708 = vmatpush3.msra.mxu0 %v1296_v23  ;;  %v1291_v21 = vld [vmem:[%s2827_s3 + $0x10] sm:$0xff] }
  0x59   : > { %1631 = vmatmul.mubr.msk.f32.gmra.mxu0 %vm348_vm1, %v284_v31  ;;  %1665 = vmatmul.mubr.msk.f32.gmra.mxu1 %vm348_vm1, %v284_v31  ;;  %v1294_v31 = vld [vmem:[%s2827_s3 + $0x28] sm:$0xff] }
  0x5a   : > { %588 = vmatprep.mubr.f32.mxu0 %v1942_v0  ;;  %845 = vmatprep.mubr.f32.mxu1 %v1942_v0 }
  0x5b   : > { %1742 = vmatprep.subr.mxu1 %v1344_v24  ;;  %1709 = vmatprep.subr.mxu0 %v1311_v26  ;;  %v1306_v26 = vld [vmem:[%s2827_s3 + $0x88] sm:$0xff] }
  0x5c   : > { %1743 = vmatpush3.msra.mxu1 %v1328_v25  ;;  %1710 = vmatpush3.msra.mxu0 %v1295_v27  ;;  %v1323_v25 = vld [vmem:[%s2827_s3 + $0x110] sm:$0xff] }
  0x5d   : > { %1632 = vmatmul.mubr.msk.f32.gmra.mxu0 %vm348_vm1, %v285_v32  ;;  %1666 = vmatmul.mubr.msk.f32.gmra.mxu1 %vm348_vm1, %v285_v32  ;;  %v1342_v32 = vld [vmem:[%s2827_s3 + $0x1a8] sm:$0xff] }
  0x5e   : > { %594 = vmatprep.mubr.f32.mxu0 %v1942_v0  ;;  %851 = vmatprep.mubr.f32.mxu1 %v1942_v0 }
  0x5f   : > { %1744 = vmatprep.subr.mxu1 %v1343_v28  ;;  %1711 = vmatprep.subr.mxu0 %v1310_v30 }
  0x60   : > { %1745 = vmatpush3.msra.mxu1 %v1327_v29  ;;  %1712 = vmatpush3.msra.mxu0 %v1294_v31  ;;  %v1290_v31 = vld [vmem:[%s2827_s3 + $0x8] sm:$0xff] }
  0x61   : > { %1633 = vmatmul.mubr.msk.f32.gmra.mxu0 %vm348_vm1, %v286_v33  ;;  %1667 = vmatmul.mubr.msk.f32.gmra.mxu1 %vm348_vm1, %v286_v33 }
  0x62   : > { %600 = vmatprep.mubr.f32.mxu0 %v1942_v0  ;;  %857 = vmatprep.mubr.f32.mxu1 %v1942_v0 }
  0x63   : > { %1746 = vmatprep.subr.mxu1 %v1342_v32  ;;  %1713 = vmatprep.subr.mxu0 %v1309_v6 }
  0x64   : > { %1714 = vmatpush3.msra.mxu0 %v1293_v7  ;;  %v1322_v7 = vld [vmem:[%s2827_s3 + $0x108] sm:$0xff] }
  0x65   : > { %1634 = vmatmul.mubr.msk.f32.gmra.mxu0 %vm348_vm1, %v287_v34  ;;  %1668 = vmatmul.mubr.msk.f32.gmra.mxu1 %vm348_vm1, %v287_v34 }
  0x66   : > { %606 = vmatprep.mubr.f32.mxu0 %v1942_v0  ;;  %863 = vmatprep.mubr.f32.mxu1 %v1942_v0 }
  0x67   : > { %1715 = vmatprep.subr.mxu0 %v1308_v12  ;;  %v1337_v12 = vld [vmem:[%s2827_s3 + $0x180] sm:$0xff] }
  0x68   : > { %1716 = vmatpush3.msra.mxu0 %v1292_v13 }
  0x69   : > { %1635 = vmatmul.mubr.msk.f32.gmra.mxu0 %vm348_vm1, %v288_v35  ;;  %1669 = vmatmul.mubr.msk.f32.gmra.mxu1 %vm348_vm1, %v288_v35  ;;  %v1326_v35 = vld [vmem:[%s2827_s3 + $0x128] sm:$0xff] }
  0x6a   : > { %612 = vmatprep.mubr.f32.mxu0 %v1942_v0  ;;  %869 = vmatprep.mubr.f32.mxu1 %v1942_v0 }
  0x6b   : > { %1747 = vmatpush3.msra.mxu1 %v1326_v35  ;;  %1717 = vmatprep.subr.mxu0 %v1307_v17  ;;  %v1338_v35 = vld [vmem:[%s2827_s3 + $0x188] sm:$0xff] }
  0x6c   : > { %1748 = vmatprep.subr.mxu1 %v1341_v8  ;;  %1718 = vmatpush3.msra.mxu0 %v1291_v21 }
  0x6d   : > { %1636 = vmatmul.mubr.msk.f32.gmra.mxu0 %vm348_vm1, %v289_v36  ;;  %1670 = vmatmul.mubr.msk.f32.gmra.mxu1 %vm348_vm1, %v289_v36 }
  0x6e   : > { %618 = vmatprep.mubr.f32.mxu0 %v1942_v0  ;;  %875 = vmatprep.mubr.f32.mxu1 %v1942_v0 }
  0x6f   : > { %1749 = vmatpush3.msra.mxu1 %v1325_v11  ;;  %1719 = vmatprep.subr.mxu0 %v1306_v26 }
  0x70   : > { %1750 = vmatprep.subr.mxu1 %v1340_v15  ;;  %1720 = vmatpush3.msra.mxu0 %v1290_v31 }
  0x71   : > { %1637 = vmatmul.mubr.msk.f32.gmra.mxu0 %vm348_vm1, %v290_v37  ;;  %1671 = vmatmul.mubr.msk.f32.gmra.mxu1 %vm348_vm1, %v290_v37 }
  0x72   : > { %624 = vmatprep.mubr.f32.mxu0 %v1942_v0  ;;  %881 = vmatprep.mubr.f32.mxu1 %v1942_v0 }
  0x73   : > { %1751 = vmatpush3.msra.mxu1 %v1324_v16 }
  0x74   : > { %1752 = vmatprep.subr.mxu1 %v1339_v22 }
  0x75   : > { %1638 = vmatmul.mubr.msk.f32.gmra.mxu0 %vm348_vm1, %v291_v38  ;;  %1672 = vmatmul.mubr.msk.f32.gmra.mxu1 %vm348_vm1, %v291_v38 }
  0x76   : > { %630 = vmatprep.mubr.f32.mxu0 %v1942_v0  ;;  %887 = vmatprep.mubr.f32.mxu1 %v1942_v0 }
  0x77   : > { %1753 = vmatpush3.msra.mxu1 %v1323_v25 }
  0x78   : > { %1754 = vmatprep.subr.mxu1 %v1338_v35 }
  0x79   : > { %1639 = vmatmul.mubr.msk.f32.gmra.mxu0 %vm348_vm1, %v292_v39  ;;  %1673 = vmatmul.mubr.msk.f32.gmra.mxu1 %vm348_vm1, %v292_v39 }
  0x7a   : > { %636 = vmatprep.mubr.f32.mxu0 %v1942_v0  ;;  %893 = vmatprep.mubr.f32.mxu1 %v1942_v0 }
  0x7b   : > { %1755 = vmatpush3.msra.mxu1 %v1322_v7 }
  0x7c   : > { %1756 = vmatprep.subr.mxu1 %v1337_v12 }
  0x7d   : > { %1640 = vmatmul.mubr.msk.f32.gmra.mxu0 %vm348_vm1, %v293_v40  ;;  %1674 = vmatmul.mubr.msk.f32.gmra.mxu1 %vm348_vm1, %v293_v40 }
  0x7e   : > { %642 = vmatprep.mubr.f32.mxu0 %v1942_v0  ;;  %899 = vmatprep.mubr.f32.mxu1 %v1942_v0 }
  0x81   : > { %1641 = vmatmul.mubr.msk.f32.gmra.mxu0 %vm348_vm1, %v294_v41  ;;  %1675 = vmatmul.mubr.msk.f32.gmra.mxu1 %vm348_vm1, %v294_v41 }
  0x82   : > { %648 = vmatprep.mubr.f32.mxu0 %v1942_v0  ;;  %905 = vmatprep.mubr.f32.mxu1 %v1942_v0 }
  0x85   : > { %1642 = vmatmul.mubr.msk.f32.gmra.mxu0 %vm348_vm1, %v295_v42  ;;  %1676 = vmatmul.mubr.msk.f32.gmra.mxu1 %vm348_vm1, %v295_v42 }
  0x86   : > { %654 = vmatprep.mubr.f32.mxu0 %v1942_v0  ;;  %911 = vmatprep.mubr.f32.mxu1 %v1942_v0 }
  0x89   : > { %1643 = vmatmul.mubr.msk.f32.gmra.mxu0 %vm348_vm1, %v296_v43  ;;  %1677 = vmatmul.mubr.msk.f32.gmra.mxu1 %vm348_vm1, %v296_v43 }
  0x8a   : > { %660 = vmatprep.mubr.f32.mxu0 %v1942_v0  ;;  %917 = vmatprep.mubr.f32.mxu1 %v1942_v0 }
  0x8d   : > { %1644 = vmatmul.mubr.msk.f32.gmra.mxu0 %vm348_vm1, %v297_v44  ;;  %1678 = vmatmul.mubr.msk.f32.gmra.mxu1 %vm348_vm1, %v297_v44 }
  0x8e   : > { %666 = vmatprep.mubr.f32.mxu0 %v1942_v0  ;;  %923 = vmatprep.mubr.f32.mxu1 %v1942_v0 }
  0x91   : > { %1645 = vmatmul.mubr.msk.f32.gmra.mxu0 %vm348_vm1, %v298_v45  ;;  %1679 = vmatmul.mubr.msk.f32.gmra.mxu1 %vm348_vm1, %v298_v45 }
  0x92   : > { %672 = vmatprep.mubr.f32.mxu0 %v1942_v0  ;;  %929 = vmatprep.mubr.f32.mxu1 %v1942_v0 }
  0x95   : > { %1646 = vmatmul.mubr.msk.f32.gmra.mxu0 %vm348_vm1, %v299_v46  ;;  %1680 = vmatmul.mubr.msk.f32.gmra.mxu1 %vm348_vm1, %v299_v46 }
  0x96   : > { %678 = vmatprep.mubr.f32.mxu0 %v1942_v0  ;;  %935 = vmatprep.mubr.f32.mxu1 %v1942_v0 }
  0x99   : > { %1647 = vmatmul.mubr.msk.f32.gmra.mxu0 %vm348_vm1, %v300_v47  ;;  %1681 = vmatmul.mubr.msk.f32.gmra.mxu1 %vm348_vm1, %v300_v47 }
  0x9a   : > { %684 = vmatprep.mubr.f32.mxu0 %v1942_v0  ;;  %941 = vmatprep.mubr.f32.mxu1 %v1942_v0 }
  0x9d   : > { %1648 = vmatmul.mubr.msk.f32.gmra.mxu0 %vm348_vm1, %v301_v48  ;;  %1682 = vmatmul.mubr.msk.f32.gmra.mxu1 %vm348_vm1, %v301_v48 }
  0x9e   : > { %690 = vmatprep.mubr.f32.mxu0 %v1942_v0  ;;  %947 = vmatprep.mubr.f32.mxu1 %v1942_v0 }
  0xa1   : > { %1649 = vmatmul.mubr.msk.f32.gmra.mxu0 %vm348_vm1, %v302_v50  ;;  %1683 = vmatmul.mubr.msk.f32.gmra.mxu1 %vm348_vm1, %v302_v50  ;;  %v269_v50 = vlaneseq }
  0xa2   : > { %696 = vmatprep.mubr.f32.mxu0 %v1942_v0  ;;  %953 = vmatprep.mubr.f32.mxu1 %v1942_v0 }
  0xa3   : > { %vm2389_vm2 = vcmp.lt.s32.totalorder %v269_v50, 512  ;;  %v2400_v58 = vshrl.u32 %v269_v50, 7 }
  0xa4   : > { %273 = vst.msk [vmem:[#allocation2] sm:$0xf] %vm2389_vm2, %v1942_v0 }
  0xa5   : > { %1650 = vmatmul.mubr.msk.f32.gmra.mxu0 %vm348_vm1, %v303_v54  ;;  %1684 = vmatmul.mubr.msk.f32.gmra.mxu1 %vm348_vm1, %v303_v54  ;;  %v330_v63 = vsub.s32 0, %v2400_v58  ;;  %v2830_v1 = vsub.s32 2, %v2400_v58  ;;  %v334_v4 = vsub.s32 1, %v2400_v58  ;;  %v342_v5 = vsub.s32 3, %v2400_v58 }
  0xa6   : > { %702 = vmatprep.mubr.f32.mxu0 %v1942_v0  ;;  %959 = vmatprep.mubr.f32.mxu1 %v1942_v0 }
  0xa9   : > { %1651 = vmatmul.mubr.msk.f32.gmra.mxu0 %vm348_vm1, %v304_v56  ;;  %1685 = vmatmul.mubr.msk.f32.gmra.mxu1 %vm348_vm1, %v304_v56 }
  0xaa   : > { %708 = vmatprep.mubr.f32.mxu0 %v1942_v0  ;;  %965 = vmatprep.mubr.f32.mxu1 %v1942_v0  ;;  %v326_v0 = vld [vmem:[%s2826_s2] sm:$0xf] }
  0xab   : > { %v2445_v14 = vrot.slane %v326_v0, %v330_v63  ;;  %v2458_v18 = vrot.slane %v326_v0, %v2830_v1  ;;  %v2472_v23 = vrot.slane %v326_v0, %v334_v4  ;;  %v2476_v24 = vrot.slane %v326_v0, %v342_v5 }
  0xad   : > { %1652 = vmatmul.mubr.msk.f32.gmra.mxu0 %vm348_vm1, %v305_v60  ;;  %1686 = vmatmul.mubr.msk.f32.gmra.mxu1 %vm348_vm1, %v305_v60 }
  0xf1   : > { %v2350_v33 = vpop.f32.mrf.mxu0  ;;  %v2352_v34 = vpop.f32.mrf.mxu1 }
  0xf2   : > { %v525_v32 = vadd.f32 %v2350_v33, %v2445_v14 }
  0xf3   : > { %v2357_v36 = vpop.f32.mrf.mxu0  ;;  %v2359_v37 = vpop.f32.mrf.mxu1 }
  0xf5   : > { %v530_v38 = vpop.f32.mrf.mxu0  ;;  %v787_v39 = vpop.f32.mrf.mxu1 }
  0xf6   : > { %v531_v27 = vadd.f32 %v530_v38, %v2445_v14  ;;  %v788_v28 = vadd.f32 %v787_v39, %v2458_v18  ;;  %v1305_v38 = vld [vmem:[%s2827_s3 + $0x80] sm:$0xff]  ;;  %v782_v39 = vadd.f32 %v2352_v34, %v2458_v18 }
  0xf7   : > { %v2361_v40 = vpop.f32.mrf.mxu0  ;;  %v2363_v41 = vpop.f32.mrf.mxu1  ;;  %v1289_v34 = vld [vmem:[%s2827_s3] sm:$0xff]  ;;  %1721 = vmatprep.subr.mxu0 %v1305_v38 }
  0xf8   : > { %v533_v50 = vadd.f32 %v2361_v40, %v2472_v23  ;;  %v790_v0 = vadd.f32 %v2363_v41, %v2476_v24  ;;  %v527_v40 = vadd.f32 %v2357_v36, %v2472_v23  ;;  %v784_v41 = vadd.f32 %v2359_v37, %v2476_v24  ;;  %v1321_v37 = vld [vmem:[%s2827_s3 + $0x100] sm:$0xff]  ;;  %1722 = vmatpush3.msra.mxu0 %v1289_v34 }
  0xf9   : > { %v2365_v42 = vpop.f32.mrf.mxu0  ;;  %v2367_v43 = vpop.f32.mrf.mxu1  ;;  %v976_v13 = vmax.f32 %v531_v27, 0.0  ;;  %v978_v15 = vmax.f32 %v788_v28, 0.0  ;;  %v974_v22 = vmax.f32 %v782_v39, 0.0  ;;  %1757 = vmatpush3.msra.mxu1 %v1321_v37 }
  0xfa   : > { %v537_v8 = vadd.f32 %v2365_v42, %v2445_v14  ;;  %v794_v11 = vadd.f32 %v2367_v43, %v2458_v18  ;;  %v977_v25 = vmax.f32 %v533_v50, 0.0  ;;  %v979_v26 = vmax.f32 %v790_v0, 0.0 }
  0xfb   : > { %v2369_v44 = vpop.f32.mrf.mxu0  ;;  %v2371_v45 = vpop.f32.mrf.mxu1  ;;  %v973_v31 = vmax.f32 %v527_v40, 0.0  ;;  %v975_v35 = vmax.f32 %v784_v41, 0.0  ;;  %v1175_v1 = vadd.f32 %v978_v15, %v974_v22 }
  0xfc   : > { %v539_v16 = vadd.f32 %v2369_v44, %v2472_v23  ;;  %v796_v42 = vadd.f32 %v2371_v45, %v2476_v24  ;;  %v972_v44 = vmax.f32 %v525_v32, 0.0  ;;  %v980_v45 = vmax.f32 %v537_v8, 0.0 }
  0xfd   : > { %v2373_v46 = vpop.f32.mrf.mxu0  ;;  %v2375_v47 = vpop.f32.mrf.mxu1  ;;  %v982_v38 = vmax.f32 %v794_v11, 0.0  ;;  %v1138_v41 = vadd.f32 %v977_v25, %v973_v31  ;;  %v1212_v8 = vadd.f32 %v979_v26, %v975_v35 }
  0xfe   : > { %v543_v43 = vadd.f32 %v2373_v46, %v2445_v14  ;;  %v800_v21 = vadd.f32 %v2375_v47, %v2458_v18  ;;  %v1101_v46 = vadd.f32 %v976_v13, %v972_v44  ;;  %v981_v0 = vmax.f32 %v539_v16, 0.0 }
  0xff   : > { %v2377_v48 = vpop.f32.mrf.mxu0  ;;  %v2379_v49 = vpop.f32.mrf.mxu1  ;;  %v983_v7 = vmax.f32 %v796_v42, 0.0  ;;  %v1176_v15 = vadd.f32 %v1175_v1, %v982_v38 }
 0x100   : > { %v545_v47 = vadd.f32 %v2377_v48, %v2472_v23  ;;  %v802_v32 = vadd.f32 %v2379_v49, %v2476_v24  ;;  %v984_v34 = vmax.f32 %v543_v43, 0.0  ;;  %v986_v40 = vmax.f32 %v800_v21, 0.0 }
 0x101   : > { %v2381_v51 = vpop.f32.mrf.mxu0  ;;  %v2383_v52 = vpop.f32.mrf.mxu1  ;;  %v1102_v49 = vadd.f32 %v1101_v46, %v980_v45  ;;  %v1139_v22 = vadd.f32 %v1138_v41, %v981_v0  ;;  %v1213_v1 = vadd.f32 %v1212_v8, %v983_v7 }
 0x102   : > { %v549_v11 = vadd.f32 %v2381_v51, %v2445_v14  ;;  %v806_v12 = vadd.f32 %v2383_v52, %v2458_v18  ;;  %v985_v42 = vmax.f32 %v545_v47, 0.0  ;;  %v987_v43 = vmax.f32 %v802_v32, 0.0 }
 0x103   : > { %v2385_v53 = vpop.f32.mrf.mxu0  ;;  %v2387_v54 = vpop.f32.mrf.mxu1  ;;  %v1103_v25 = vadd.f32 %v1102_v49, %v984_v34  ;;  %v1177_v26 = vadd.f32 %v1176_v15, %v986_v40 }
 0x104   : > { %v551_v16 = vadd.f32 %v2385_v53, %v2472_v23  ;;  %v808_v37 = vadd.f32 %v2387_v54, %v2476_v24  ;;  %v988_v53 = vmax.f32 %v549_v11, 0.0  ;;  %v990_v31 = vmax.f32 %v806_v12, 0.0 }
 0x105   : > { %v2396_v56 = vpop.f32.mrf.mxu0  ;;  %v2398_v57 = vpop.f32.mrf.mxu1  ;;  %v1140_v32 = vadd.f32 %v1139_v22, %v985_v42  ;;  %v1214_v0 = vadd.f32 %v1213_v1, %v987_v43 }
 0x106   : > { %v555_v51 = vadd.f32 %v2396_v56, %v2445_v14  ;;  %v812_v52 = vadd.f32 %v2398_v57, %v2458_v18  ;;  %v989_v57 = vmax.f32 %v551_v16, 0.0  ;;  %v991_v38 = vmax.f32 %v808_v37, 0.0 }
 0x107   : > { %v2402_v59 = vpop.f32.mrf.mxu0  ;;  %v2404_v60 = vpop.f32.mrf.mxu1  ;;  %v1104_v8 = vadd.f32 %v1103_v25, %v988_v53  ;;  %v1178_v11 = vadd.f32 %v1177_v26, %v990_v31 }
 0x108   : > { %v557_v54 = vadd.f32 %v2402_v59, %v2472_v23  ;;  %v814_v35 = vadd.f32 %v2404_v60, %v2476_v24  ;;  %v992_v7 = vmax.f32 %v555_v51, 0.0  ;;  %v994_v34 = vmax.f32 %v812_v52, 0.0 }
 0x109   : > { %v2406_v61 = vpop.f32.mrf.mxu0  ;;  %v2408_v62 = vpop.f32.mrf.mxu1  ;;  %v1141_v37 = vadd.f32 %v1140_v32, %v989_v57  ;;  %v1215_v42 = vadd.f32 %v1214_v0, %v991_v38 }
 0x10a   : > { %v561_v46 = vadd.f32 %v2406_v61, %v2445_v14  ;;  %v818_v47 = vadd.f32 %v2408_v62, %v2458_v18  ;;  %v993_v12 = vmax.f32 %v557_v54, 0.0  ;;  %v995_v49 = vmax.f32 %v814_v35, 0.0 }
 0x10b   : > { %v2415_v2 = vpop.f32.mrf.mxu0  ;;  %v2417_v3 = vpop.f32.mrf.mxu1  ;;  %v1105_v51 = vadd.f32 %v1104_v8, %v992_v7 }
 0x10c   : > { %v563_v60 = vadd.f32 %v2415_v2, %v2472_v23  ;;  %v820_v41 = vadd.f32 %v2417_v3, %v2476_v24  ;;  %v996_v2 = vmax.f32 %v561_v46, 0.0  ;;  %v998_v43 = vmax.f32 %v818_v47, 0.0 }
 0x10d   : > { %v2430_v9 = vpop.f32.mrf.mxu0  ;;  %v2432_v10 = vpop.f32.mrf.mxu1  ;;  %v1179_v3 = vadd.f32 %v1178_v11, %v994_v34  ;;  %v1142_v31 = vadd.f32 %v1141_v37, %v993_v12  ;;  %v1216_v54 = vadd.f32 %v1215_v42, %v995_v49 }
 0x10e   : > { %v567_v61 = vadd.f32 %v2430_v9, %v2445_v14  ;;  %v824_v62 = vadd.f32 %v2432_v10, %v2458_v18  ;;  %v997_v1 = vmax.f32 %v563_v60, 0.0  ;;  %v999_v25 = vmax.f32 %v820_v41, 0.0 }
 0x10f   : > { %v2460_v19 = vpop.f32.mrf.mxu0  ;;  %v2462_v20 = vpop.f32.mrf.mxu1  ;;  %v1180_v46 = vadd.f32 %v1179_v3, %v998_v43 }
 0x110   : > { %v569_v9 = vadd.f32 %v2460_v19, %v2472_v23  ;;  %v826_v10 = vadd.f32 %v2462_v20, %v2476_v24  ;;  %v1000_v26 = vmax.f32 %v567_v61, 0.0  ;;  %v1002_v53 = vmax.f32 %v824_v62, 0.0 }
 0x111   : > { %v2486_v29 = vpop.f32.mrf.mxu0  ;;  %v2488_v30 = vpop.f32.mrf.mxu1  ;;  %v1106_v20 = vadd.f32 %v1105_v51, %v996_v2  ;;  %v1143_v41 = vadd.f32 %v1142_v31, %v997_v1  ;;  %v1217_v61 = vadd.f32 %v1216_v54, %v999_v25 }
 0x112   : > { %v573_v35 = vadd.f32 %v2486_v29, %v2445_v14  ;;  %v830_v57 = vadd.f32 %v2488_v30, %v2458_v18  ;;  %v1001_v0 = vmax.f32 %v569_v9, 0.0  ;;  %v1003_v7 = vmax.f32 %v826_v10, 0.0 }
 0x113   : > { %v2507_v33 = vpop.f32.mrf.mxu0  ;;  %v2509_v6 = vpop.f32.mrf.mxu1  ;;  %v1107_v62 = vadd.f32 %v1106_v20, %v1000_v26  ;;  %v1181_v8 = vadd.f32 %v1180_v46, %v1002_v53 }
 0x114   : > { %v575_v47 = vadd.f32 %v2507_v33, %v2472_v23  ;;  %v832_v32 = vadd.f32 %v2509_v6, %v2476_v24  ;;  %v1004_v33 = vmax.f32 %v573_v35, 0.0  ;;  %v1006_v11 = vmax.f32 %v830_v57, 0.0 }
 0x115   : > { %v2530_v36 = vpop.f32.mrf.mxu0  ;;  %v2532_v17 = vpop.f32.mrf.mxu1  ;;  %v1144_v43 = vadd.f32 %v1143_v41, %v1001_v0  ;;  %v1218_v51 = vadd.f32 %v1217_v61, %v1003_v7 }
 0x116   : > { %v579_v29 = vadd.f32 %v2530_v36, %v2445_v14  ;;  %v836_v30 = vadd.f32 %v2532_v17, %v2458_v18  ;;  %v1005_v17 = vmax.f32 %v575_v47, 0.0  ;;  %v1007_v37 = vmax.f32 %v832_v32, 0.0 }
 0x117   : > { %v2543_v27 = vpop.f32.mrf.mxu0  ;;  %v2545_v28 = vpop.f32.mrf.mxu1  ;;  %v1108_v25 = vadd.f32 %v1107_v62, %v1004_v33  ;;  %v1182_v26 = vadd.f32 %v1181_v8, %v1006_v11 }
 0x118   : > { %v581_v6 = vadd.f32 %v2543_v27, %v2472_v23  ;;  %v838_v12 = vadd.f32 %v2545_v28, %v2476_v24  ;;  %v1008_v3 = vmax.f32 %v579_v29, 0.0  ;;  %v1010_v9 = vmax.f32 %v836_v30, 0.0 }
 0x119   : > { %v2551_v39 = vpop.f32.mrf.mxu0  ;;  %v2553_v50 = vpop.f32.mrf.mxu1  ;;  %v1145_v57 = vadd.f32 %v1144_v43, %v1005_v17  ;;  %v1219_v20 = vadd.f32 %v1218_v51, %v1007_v37 }
 0x11a   : > { %v585_v42 = vadd.f32 %v2551_v39, %v2445_v14  ;;  %v842_v2 = vadd.f32 %v2553_v50, %v2458_v18  ;;  %v1009_v53 = vmax.f32 %v581_v6, 0.0  ;;  %v1011_v31 = vmax.f32 %v838_v12, 0.0 }
 0x11b   : > { %v2559_v48 = vpop.f32.mrf.mxu0  ;;  %v2561_v13 = vpop.f32.mrf.mxu1  ;;  %v1109_v47 = vadd.f32 %v1108_v25, %v1008_v3 }
 0x11c   : > { %v587_v28 = vadd.f32 %v2559_v48, %v2472_v23  ;;  %v844_v1 = vadd.f32 %v2561_v13, %v2476_v24  ;;  %v1012_v48 = vmax.f32 %v585_v42, 0.0  ;;  %v1014_v46 = vmax.f32 %v842_v2, 0.0 }
 0x11d   : > { %v2571_v21 = vpop.f32.mrf.mxu0  ;;  %v2573_v44 = vpop.f32.mrf.mxu1  ;;  %v1183_v13 = vadd.f32 %v1182_v26, %v1010_v9  ;;  %v1146_v61 = vadd.f32 %v1145_v57, %v1009_v53  ;;  %v1220_v62 = vadd.f32 %v1219_v20, %v1011_v31 }
 0x11e   : > { %v591_v39 = vadd.f32 %v2571_v21, %v2445_v14  ;;  %v848_v50 = vadd.f32 %v2573_v44, %v2458_v18  ;;  %v1013_v7 = vmax.f32 %v587_v28, 0.0  ;;  %v1015_v29 = vmax.f32 %v844_v1, 0.0 }
 0x11f   : > { %v2579_v56 = vpop.f32.mrf.mxu0  ;;  %v2581_v45 = vpop.f32.mrf.mxu1  ;;  %v1184_v6 = vadd.f32 %v1183_v13, %v1014_v46 }
 0x120   : > { %v593_v21 = vadd.f32 %v2579_v56, %v2472_v23  ;;  %v850_v44 = vadd.f32 %v2581_v45, %v2476_v24  ;;  %v1016_v30 = vmax.f32 %v591_v39, 0.0  ;;  %v1018_v41 = vmax.f32 %v848_v50, 0.0 }
 0x121   : > { %v2587_v59 = vpop.f32.mrf.mxu0  ;;  %v2589_v40 = vpop.f32.mrf.mxu1  ;;  %v1110_v45 = vadd.f32 %v1109_v47, %v1012_v48  ;;  %v1147_v51 = vadd.f32 %v1146_v61, %v1013_v7  ;;  %v1221_v3 = vadd.f32 %v1220_v62, %v1015_v29 }
 0x122   : > { %v597_v8 = vadd.f32 %v2587_v59, %v2445_v14  ;;  %v854_v33 = vadd.f32 %v2589_v40, %v2458_v18  ;;  %v1017_v37 = vmax.f32 %v593_v21, 0.0  ;;  %v1019_v42 = vmax.f32 %v850_v44, 0.0 }
 0x123   : > { %v2599_v15 = vpop.f32.mrf.mxu0  ;;  %v2601_v16 = vpop.f32.mrf.mxu1  ;;  %v1111_v9 = vadd.f32 %v1110_v45, %v1016_v30  ;;  %v1185_v28 = vadd.f32 %v1184_v6, %v1018_v41 }
 0x124   : > { %v599_v12 = vadd.f32 %v2599_v15, %v2472_v23  ;;  %v856_v17 = vadd.f32 %v2601_v16, %v2476_v24  ;;  %v1020_v1 = vmax.f32 %v597_v8, 0.0  ;;  %v1022_v39 = vmax.f32 %v854_v33, 0.0 }
 0x125   : > { %v2607_v52 = vpop.f32.mrf.mxu0  ;;  %v2609_v22 = vpop.f32.mrf.mxu1  ;;  %v1148_v31 = vadd.f32 %v1147_v51, %v1017_v37  ;;  %v1222_v57 = vadd.f32 %v1221_v3, %v1019_v42 }
 0x126   : > { %v603_v59 = vadd.f32 %v2607_v52, %v2445_v14  ;;  %v860_v40 = vadd.f32 %v2609_v22, %v2458_v18  ;;  %v1021_v52 = vmax.f32 %v599_v12, 0.0  ;;  %v1023_v26 = vmax.f32 %v856_v17, 0.0 }
 0x127   : > { %v2615_v19 = vpop.f32.mrf.mxu0  ;;  %v2617_v38 = vpop.f32.mrf.mxu1  ;;  %v1112_v21 = vadd.f32 %v1111_v9, %v1020_v1 }
 0x128   : > { %v605_v15 = vadd.f32 %v2615_v19, %v2472_v23  ;;  %v862_v16 = vadd.f32 %v2617_v38, %v2476_v24  ;;  %v1024_v20 = vmax.f32 %v603_v59, 0.0  ;;  %v1026_v48 = vmax.f32 %v860_v40, 0.0 }
 0x129   : > { %v2627_v34 = vpop.f32.mrf.mxu0  ;;  %v2629_v60 = vpop.f32.mrf.mxu1  ;;  %v1149_v41 = vadd.f32 %v1148_v31, %v1021_v52  ;;  %v1223_v61 = vadd.f32 %v1222_v57, %v1023_v26 }
 0x12a   : > { %v609_v22 = vadd.f32 %v2627_v34, %v2445_v14  ;;  %v866_v53 = vadd.f32 %v2629_v60, %v2458_v18  ;;  %v1186_v60 = vadd.f32 %v1185_v28, %v1022_v39  ;;  %v1025_v44 = vmax.f32 %v605_v15, 0.0 }
 0x12b   : > { %v2635_v36 = vpop.f32.mrf.mxu0  ;;  %v2637_v49 = vpop.f32.mrf.mxu1  ;;  %v1027_v7 = vmax.f32 %v862_v16, 0.0 }
 0x12c   : > { %v611_v19 = vadd.f32 %v2635_v36, %v2472_v23  ;;  %v868_v38 = vadd.f32 %v2637_v49, %v2476_v24  ;;  %v1028_v62 = vmax.f32 %v609_v22, 0.0  ;;  %v1030_v8 = vmax.f32 %v866_v53, 0.0 }
 0x12d   : > { %v2643_v27 = vpop.f32.mrf.mxu0  ;;  %v2645_v10 = vpop.f32.mrf.mxu1  ;;  %v1113_v36 = vadd.f32 %v1112_v21, %v1024_v20  ;;  %v1187_v33 = vadd.f32 %v1186_v60, %v1026_v48  ;;  %v1150_v42 = vadd.f32 %v1149_v41, %v1025_v44  ;;  %v1224_v59 = vadd.f32 %v1223_v61, %v1027_v7 }
 0x12e   : > { %v615_v13 = vadd.f32 %v2643_v27, %v2445_v14  ;;  %v872_v34 = vadd.f32 %v2645_v10, %v2458_v18  ;;  %v1029_v6 = vmax.f32 %v611_v19, 0.0  ;;  %v1031_v12 = vmax.f32 %v868_v38, 0.0 }
 0x12f   : > { %v2655_v54 = vpop.f32.mrf.mxu0  ;;  %v2657_v35 = vpop.f32.mrf.mxu1  ;;  %v1188_v28 = vadd.f32 %v1187_v33, %v1030_v8 }
 0x130   : > { %v617_v49 = vadd.f32 %v2655_v54, %v2472_v23  ;;  %v874_v27 = vadd.f32 %v2657_v35, %v2476_v24  ;;  %v1032_v17 = vmax.f32 %v615_v13, 0.0  ;;  %v1034_v37 = vmax.f32 %v872_v34, 0.0 }
 0x131   : > { %v2663_v32 = vpop.f32.mrf.mxu0  ;;  %v2665_v0 = vpop.f32.mrf.mxu1  ;;  %v1114_v54 = vadd.f32 %v1113_v36, %v1028_v62  ;;  %v1151_v22 = vadd.f32 %v1150_v42, %v1029_v6 }
 0x132   : > { %v621_v40 = vadd.f32 %v2663_v32, %v2445_v14  ;;  %v878_v51 = vadd.f32 %v2665_v0, %v2458_v18  ;;  %v1033_v39 = vmax.f32 %v617_v49, 0.0  ;;  %v1035_v15 = vmax.f32 %v874_v27, 0.0 }
 0x133   : > { %v2671_v56 = vpop.f32.mrf.mxu0  ;;  %v2673_v11 = vpop.f32.mrf.mxu1  ;;  %v1225_v0 = vadd.f32 %v1224_v59, %v1031_v12  ;;  %v1115_v53 = vadd.f32 %v1114_v54, %v1032_v17  ;;  %v1189_v31 = vadd.f32 %v1188_v28, %v1034_v37 }
 0x134   : > { %v623_v35 = vadd.f32 %v2671_v56, %v2472_v23  ;;  %v880_v1 = vadd.f32 %v2673_v11, %v2476_v24  ;;  %v1036_v57 = vmax.f32 %v621_v40, 0.0  ;;  %v1038_v20 = vmax.f32 %v878_v51, 0.0 }
 0x135   : > { %v626_v2 = vpop.f32.mrf.mxu0  ;;  %v883_v43 = vpop.f32.mrf.mxu1  ;;  %v1152_v34 = vadd.f32 %v1151_v22, %v1033_v39  ;;  %v1226_v21 = vadd.f32 %v1225_v0, %v1035_v15 }
 0x136   : > { %v627_v16 = vadd.f32 %v626_v2, %v2445_v14  ;;  %v884_v52 = vadd.f32 %v883_v43, %v2458_v18  ;;  %v1037_v38 = vmax.f32 %v623_v35, 0.0  ;;  %v1039_v13 = vmax.f32 %v880_v1, 0.0 }
 0x137   : > { %v628_v50 = vpop.f32.mrf.mxu0  ;;  %v885_v25 = vpop.f32.mrf.mxu1  ;;  %v1116_v8 = vadd.f32 %v1115_v53, %v1036_v57  ;;  %v1190_v36 = vadd.f32 %v1189_v31, %v1038_v20 }
 0x138   : > { %v629_v48 = vadd.f32 %v628_v50, %v2472_v23  ;;  %v886_v56 = vadd.f32 %v885_v25, %v2476_v24  ;;  %v1040_v60 = vmax.f32 %v627_v16, 0.0  ;;  %v1042_v44 = vmax.f32 %v884_v52, 0.0 }
 0x139   : > { %v632_v46 = vpop.f32.mrf.mxu0  ;;  %v889_v47 = vpop.f32.mrf.mxu1  ;;  %v1153_v27 = vadd.f32 %v1152_v34, %v1037_v38  ;;  %v1227_v6 = vadd.f32 %v1226_v21, %v1039_v13 }
 0x13a   : > { %v633_v2 = vadd.f32 %v632_v46, %v2445_v14  ;;  %v890_v43 = vadd.f32 %v889_v47, %v2458_v18  ;;  %v1041_v33 = vmax.f32 %v629_v48, 0.0  ;;  %v1043_v46 = vmax.f32 %v886_v56, 0.0 }
 0x13b   : > { %v634_v29 = vpop.f32.mrf.mxu0  ;;  %v891_v30 = vpop.f32.mrf.mxu1  ;;  %v1117_v37 = vadd.f32 %v1116_v8, %v1040_v60  ;;  %v1191_v42 = vadd.f32 %v1190_v36, %v1042_v44 }
 0x13c   : > { %v635_v61 = vadd.f32 %v634_v29, %v2472_v23  ;;  %v892_v50 = vadd.f32 %v891_v30, %v2476_v24  ;;  %v1044_v12 = vmax.f32 %v633_v2, 0.0  ;;  %v1046_v17 = vmax.f32 %v890_v43, 0.0 }
 0x13d   : > { %v638_v45 = vpop.f32.mrf.mxu0  ;;  %v895_v10 = vpop.f32.mrf.mxu1  ;;  %v1154_v28 = vadd.f32 %v1153_v27, %v1041_v33  ;;  %v1228_v35 = vadd.f32 %v1227_v6, %v1043_v46 }
 0x13e   : > { %v639_v25 = vadd.f32 %v638_v45, %v2445_v14  ;;  %v896_v62 = vadd.f32 %v895_v10, %v2458_v18  ;;  %v1045_v40 = vmax.f32 %v635_v61, 0.0  ;;  %v1047_v10 = vmax.f32 %v892_v50, 0.0 }
 0x13f   : > { %v640_v3 = vpop.f32.mrf.mxu0  ;;  %v897_v9 = vpop.f32.mrf.mxu1  ;;  %v1118_v52 = vadd.f32 %v1117_v37, %v1044_v12  ;;  %v1192_v22 = vadd.f32 %v1191_v42, %v1046_v17 }
 0x140   : > { %v641_v29 = vadd.f32 %v640_v3, %v2472_v23  ;;  %v898_v30 = vadd.f32 %v897_v9, %v2476_v24  ;;  %v1048_v51 = vmax.f32 %v639_v25, 0.0  ;;  %v1050_v54 = vmax.f32 %v896_v62, 0.0 }
 0x141   : > { %v644_v32 = vpop.f32.mrf.mxu0  ;;  %v901_v26 = vpop.f32.mrf.mxu1  ;;  %v1155_v56 = vadd.f32 %v1154_v28, %v1045_v40 }
 0x142   : > { %v645_v1 = vadd.f32 %v644_v32, %v2445_v14  ;;  %v902_v39 = vadd.f32 %v901_v26, %v2458_v18  ;;  %v1049_v0 = vmax.f32 %v641_v29, 0.0  ;;  %v1051_v53 = vmax.f32 %v898_v30, 0.0 }
 0x143   : > { %v646_v19 = vpop.f32.mrf.mxu0  ;;  %v903_v11 = vpop.f32.mrf.mxu1  ;;  %v1229_v32 = vadd.f32 %v1228_v35, %v1047_v10  ;;  %v1119_v38 = vadd.f32 %v1118_v52, %v1048_v51  ;;  %v1193_v26 = vadd.f32 %v1192_v22, %v1050_v54 }
 0x144   : > { %v647_v3 = vadd.f32 %v646_v19, %v2472_v23  ;;  %v904_v9 = vadd.f32 %v903_v11, %v2476_v24  ;;  %v1052_v13 = vmax.f32 %v645_v1, 0.0  ;;  %v1054_v2 = vmax.f32 %v902_v39, 0.0 }
 0x145   : > { %v650_v7 = vpop.f32.mrf.mxu0  ;;  %v907_v41 = vpop.f32.mrf.mxu1  ;;  %v1230_v61 = vadd.f32 %v1229_v32, %v1051_v53 }
 0x146   : > { %v651_v31 = vadd.f32 %v650_v7, %v2445_v14  ;;  %v908_v57 = vadd.f32 %v907_v41, %v2458_v18  ;;  %v1053_v21 = vmax.f32 %v647_v3, 0.0  ;;  %v1055_v60 = vmax.f32 %v904_v9, 0.0 }
 0x147   : > { %v652_v49 = vpop.f32.mrf.mxu0  ;;  %v909_v47 = vpop.f32.mrf.mxu1  ;;  %v1156_v41 = vadd.f32 %v1155_v56, %v1049_v0  ;;  %v1194_v27 = vadd.f32 %v1193_v26, %v1054_v2 }
 0x148   : > { %v653_v43 = vadd.f32 %v652_v49, %v2472_v23  ;;  %v910_v19 = vadd.f32 %v909_v47, %v2476_v24  ;;  %v1056_v50 = vmax.f32 %v651_v31, 0.0  ;;  %v1058_v25 = vmax.f32 %v908_v57, 0.0 }
 0x149   : > { %v656_v59 = vpop.f32.mrf.mxu0  ;;  %v913_v45 = vpop.f32.mrf.mxu1  ;;  %v1120_v47 = vadd.f32 %v1119_v38, %v1052_v13  ;;  %v1157_v42 = vadd.f32 %v1156_v41, %v1053_v21  ;;  %v1231_v29 = vadd.f32 %v1230_v61, %v1055_v60 }
 0x14a   : > { %v657_v44 = vadd.f32 %v656_v59, %v2445_v14  ;;  %v914_v7 = vadd.f32 %v913_v45, %v2458_v18  ;;  %v1057_v6 = vmax.f32 %v653_v43, 0.0  ;;  %v1059_v12 = vmax.f32 %v910_v19, 0.0 }
 0x14b   : > { %v658_v15 = vpop.f32.mrf.mxu0  ;;  %v915_v16 = vpop.f32.mrf.mxu1  ;;  %v1121_v45 = vadd.f32 %v1120_v47, %v1056_v50  ;;  %v1195_v40 = vadd.f32 %v1194_v27, %v1058_v25 }
 0x14c   : > { %v659_v36 = vadd.f32 %v658_v15, %v2472_v23  ;;  %v916_v33 = vadd.f32 %v915_v16, %v2476_v24  ;;  %v1060_v30 = vmax.f32 %v657_v44, 0.0  ;;  %v1062_v59 = vmax.f32 %v914_v7, 0.0 }
 0x14d   : > { %v662_v20 = vpop.f32.mrf.mxu0  ;;  %v919_v48 = vpop.f32.mrf.mxu1  ;;  %v1158_v16 = vadd.f32 %v1157_v42, %v1057_v6  ;;  %v1232_v52 = vadd.f32 %v1231_v29, %v1059_v12 }
 0x14e   : > { %v663_v46 = vadd.f32 %v662_v20, %v2445_v14  ;;  %v920_v49 = vadd.f32 %v919_v48, %v2458_v18  ;;  %v1061_v35 = vmax.f32 %v659_v36, 0.0  ;;  %v1063_v1 = vmax.f32 %v916_v33, 0.0 }
 0x14f   : > { %v664_v34 = vpop.f32.mrf.mxu0  ;;  %v921_v11 = vpop.f32.mrf.mxu1  ;;  %v1122_v53 = vadd.f32 %v1121_v45, %v1060_v30  ;;  %v1196_v31 = vadd.f32 %v1195_v40, %v1062_v59 }
 0x150   : > { %v665_v10 = vadd.f32 %v664_v34, %v2472_v23  ;;  %v922_v51 = vadd.f32 %v921_v11, %v2476_v24  ;;  %v1064_v39 = vmax.f32 %v663_v46, 0.0  ;;  %v1066_v15 = vmax.f32 %v920_v49, 0.0 }
 0x151   : > { %v668_v62 = vpop.f32.mrf.mxu0  ;;  %v925_v8 = vpop.f32.mrf.mxu1  ;;  %v1159_v2 = vadd.f32 %v1158_v16, %v1061_v35  ;;  %v1233_v43 = vadd.f32 %v1232_v52, %v1063_v1 }
 0x152   : > { %v669_v22 = vadd.f32 %v668_v62, %v2445_v14  ;;  %v926_v3 = vadd.f32 %v925_v8, %v2458_v18  ;;  %v1065_v48 = vmax.f32 %v665_v10, 0.0  ;;  %v1067_v56 = vmax.f32 %v922_v51, 0.0 }
 0x153   : > { %v670_v17 = vpop.f32.mrf.mxu0  ;;  %v927_v37 = vpop.f32.mrf.mxu1  ;;  %v1123_v19 = vadd.f32 %v1122_v53, %v1064_v39  ;;  %v1197_v34 = vadd.f32 %v1196_v31, %v1066_v15 }
 0x154   : > { %v671_v57 = vadd.f32 %v670_v17, %v2472_v23  ;;  %v928_v20 = vadd.f32 %v927_v37, %v2476_v24  ;;  %v1068_v11 = vmax.f32 %v669_v22, 0.0  ;;  %v1070_v21 = vmax.f32 %v926_v3, 0.0 }
 0x155   : > { %v674_v54 = vpop.f32.mrf.mxu0  ;;  %v931_v28 = vpop.f32.mrf.mxu1  ;;  %v1160_v8 = vadd.f32 %v1159_v2, %v1065_v48  ;;  %v1234_v36 = vadd.f32 %v1233_v43, %v1067_v56 }
 0x156   : > { %v675_v32 = vadd.f32 %v674_v54, %v2445_v14  ;;  %v932_v38 = vadd.f32 %v931_v28, %v2458_v18  ;;  %v1069_v61 = vmax.f32 %v671_v57, 0.0  ;;  %v1071_v50 = vmax.f32 %v928_v20, 0.0 }
 0x157   : > { %v676_v9 = vpop.f32.mrf.mxu0  ;;  %v933_v0 = vpop.f32.mrf.mxu1  ;;  %v1124_v37 = vadd.f32 %v1123_v19, %v1068_v11  ;;  %v1198_v42 = vadd.f32 %v1197_v34, %v1070_v21 }
 0x158   : > { %v677_v60 = vadd.f32 %v676_v9, %v2472_v23  ;;  %v934_v44 = vadd.f32 %v933_v0, %v2476_v24  ;;  %v1072_v33 = vmax.f32 %v675_v32, 0.0  ;;  %v1074_v46 = vmax.f32 %v932_v38, 0.0 }
 0x159   : > { %v680_v26 = vpop.f32.mrf.mxu0  ;;  %v937_v13 = vpop.f32.mrf.mxu1  ;;  %v1161_v40 = vadd.f32 %v1160_v8, %v1069_v61  ;;  %v1235_v10 = vadd.f32 %v1234_v36, %v1071_v50 }
 0x15a   : > { %v681_v25 = vadd.f32 %v680_v26, %v2445_v14  ;;  %v938_v62 = vadd.f32 %v937_v13, %v2458_v18  ;;  %v1073_v29 = vmax.f32 %v677_v60, 0.0  ;;  %v1075_v30 = vmax.f32 %v934_v44, 0.0 }
 0x15b   : > { %v682_v7 = vpop.f32.mrf.mxu0  ;;  %v939_v41 = vpop.f32.mrf.mxu1  ;;  %v1125_v28 = vadd.f32 %v1124_v37, %v1072_v33  ;;  %v1199_v35 = vadd.f32 %v1198_v42, %v1074_v46 }
 0x15c   : > { %v683_v27 = vadd.f32 %v682_v7, %v2472_v23  ;;  %v940_v6 = vadd.f32 %v939_v41, %v2476_v24  ;;  %v1076_v51 = vmax.f32 %v681_v25, 0.0  ;;  %v1078_v54 = vmax.f32 %v938_v62, 0.0 }
 0x15d   : > { %v686_v49 = vpop.f32.mrf.mxu0  ;;  %v943_v47 = vpop.f32.mrf.mxu1  ;;  %v1162_v0 = vadd.f32 %v1161_v40, %v1073_v29  ;;  %v1236_v53 = vadd.f32 %v1235_v10, %v1075_v30 }
 0x15e   : > { %v687_v12 = vadd.f32 %v686_v49, %v2445_v14  ;;  %v944_v17 = vadd.f32 %v943_v47, %v2458_v18  ;;  %v1077_v52 = vmax.f32 %v683_v27, 0.0  ;;  %v1079_v22 = vmax.f32 %v940_v6, 0.0 }
 0x15f   : > { %v688_v59 = vpop.f32.mrf.mxu0  ;;  %v945_v45 = vpop.f32.mrf.mxu1  ;;  %v1126_v56 = vadd.f32 %v1125_v28, %v1076_v51  ;;  %v1200_v32 = vadd.f32 %v1199_v35, %v1078_v54 }
 0x160   : > { %v689_v1 = vadd.f32 %v688_v59, %v2472_v23  ;;  %v946_v39 = vadd.f32 %v945_v45, %v2476_v24  ;;  %v1080_v3 = vmax.f32 %v687_v12, 0.0  ;;  %v1082_v9 = vmax.f32 %v944_v17, 0.0 }
 0x161   : > { %v692_v15 = vpop.f32.mrf.mxu0  ;;  %v949_v16 = vpop.f32.mrf.mxu1  ;;  %v1163_v34 = vadd.f32 %v1162_v0, %v1077_v52  ;;  %v1237_v11 = vadd.f32 %v1236_v53, %v1079_v22 }
 0x162   : > { %v693_v31 = vadd.f32 %v692_v15, %v2445_v14  ;;  %v950_v57 = vadd.f32 %v949_v16, %v2458_v18  ;;  %v1081_v13 = vmax.f32 %v689_v1, 0.0  ;;  %v1083_v2 = vmax.f32 %v946_v39, 0.0 }
 0x163   : > { %v694_v20 = vpop.f32.mrf.mxu0  ;;  %v951_v48 = vpop.f32.mrf.mxu1  ;;  %v1127_v21 = vadd.f32 %v1126_v56, %v1080_v3  ;;  %v1201_v60 = vadd.f32 %v1200_v32, %v1082_v9 }
 0x164   : > { %v695_v38 = vadd.f32 %v694_v20, %v2472_v23  ;;  %v952_v26 = vadd.f32 %v951_v48, %v2476_v24  ;;  %v1084_v44 = vmax.f32 %v693_v31, 0.0  ;;  %v1086_v7 = vmax.f32 %v950_v57, 0.0 }
 0x165   : > { %v698_v43 = vpop.f32.mrf.mxu0  ;;  %v955_v19 = vpop.f32.mrf.mxu1  ;;  %v1164_v46 = vadd.f32 %v1163_v34, %v1081_v13  ;;  %v1238_v49 = vadd.f32 %v1237_v11, %v1083_v2 }
 0x166   : > { %v699_v41 = vadd.f32 %v698_v43, %v2445_v14  ;;  %v956_v61 = vadd.f32 %v955_v19, %v2458_v18  ;;  %v1085_v62 = vmax.f32 %v695_v38, 0.0  ;;  %v1087_v8 = vmax.f32 %v952_v26, 0.0 }
 0x167   : > { %v700_v50 = vpop.f32.mrf.mxu0  ;;  %v957_v25 = vpop.f32.mrf.mxu1  ;;  %v1128_v30 = vadd.f32 %v1127_v21, %v1084_v44  ;;  %v1202_v59 = vadd.f32 %v1201_v60, %v1086_v7 }
 0x168   : > { %v701_v36 = vadd.f32 %v700_v50, %v2472_v23  ;;  %v958_v33 = vadd.f32 %v957_v25, %v2476_v24  ;;  %v1088_v47 = vmax.f32 %v699_v41, 0.0  ;;  %v1090_v27 = vmax.f32 %v956_v61, 0.0 }
 0x169   : > { %v704_v6 = vpop.f32.mrf.mxu0  ;;  %v961_v12 = vpop.f32.mrf.mxu1  ;;  %v1165_v10 = vadd.f32 %v1164_v46, %v1085_v62  ;;  %v1239_v51 = vadd.f32 %v1238_v49, %v1087_v8  ;;  %v1943_v25 = vmov 1966171168  }
 0x16a   : > { %v1089_v17 = vmax.f32 %v701_v36, 0.0  ;;  %v1091_v37 = vmax.f32 %v958_v33, 0.0  ;;  %v705_v42 = vadd.f32 %v704_v6, %v2445_v14  ;;  %v962_v29 = vadd.f32 %v961_v12, %v2458_v18 }
 0x16b   : > { %v706_v45 = vpop.f32.mrf.mxu0  ;;  %v963_v40 = vpop.f32.mrf.mxu1  ;;  %v1129_v35 = vadd.f32 %v1128_v30, %v1088_v47  ;;  %v1203_v1 = vadd.f32 %v1202_v59, %v1090_v27  ;;  %v1256_v62 = vunpack.c.l.s4 %v1943_v25 }
 0x16c   : > { %v1092_v54 = vmax.f32 %v705_v42, 0.0  ;;  %v1094_v28 = vmax.f32 %v962_v29, 0.0  ;;  %v707_v39 = vadd.f32 %v706_v45, %v2472_v23  ;;  %v964_v15 = vadd.f32 %v963_v40, %v2476_v24 }
 0x16d   : > { %v710_v16 = vpop.f32.mrf.mxu0  ;;  %v967_v52 = vpop.f32.mrf.mxu1  ;;  %v1166_v22 = vadd.f32 %v1165_v10, %v1089_v17  ;;  %v1240_v3 = vadd.f32 %v1239_v51, %v1091_v37  ;;  %v1257_v27 = vunpack.c.0.s8 %v1256_v62 }
 0x16e   : > { %v711_v9 = vadd.f32 %v710_v16, %v2445_v14  ;;  %v968_v0 = vadd.f32 %v967_v52, %v2458_v18  ;;  %v1130_v53 = vadd.f32 %v1129_v35, %v1092_v54  ;;  %v1204_v31 = vadd.f32 %v1203_v1, %v1094_v28 }
 0x16f   : > { %v1093_v57 = vmax.f32 %v707_v39, 0.0  ;;  %v1095_v20 = vmax.f32 %v964_v15, 0.0  ;;  %v712_v48 = vpop.f32.mrf.mxu0  ;;  %v969_v56 = vpop.f32.mrf.mxu1  ;;  %v1260_v30 = vsub.s32 %v1257_v27, %v2400_v58  ;;  %v1100_v39 = vld [vmem:[#allocation2] sm:$0xf] }
 0x170   : > { %v1096_v32 = vmax.f32 %v711_v9, 0.0  ;;  %v1098_v38 = vmax.f32 %v968_v0, 0.0  ;;  %v713_v26 = vadd.f32 %v712_v48, %v2472_v23  ;;  %v970_v13 = vadd.f32 %v969_v56, %v2476_v24 }
 0x171   : > { %v1167_v2 = vadd.f32 %v1166_v22, %v1093_v57  ;;  %v1241_v43 = vadd.f32 %v1240_v3, %v1095_v20 }
 0x172   : > { %v1131_v19 = vadd.f32 %v1130_v53, %v1096_v32  ;;  %v1205_v34 = vadd.f32 %v1204_v31, %v1098_v38  ;;  %v1097_v11 = vmax.f32 %v713_v26, 0.0  ;;  %v1099_v14 = vmax.f32 %v970_v13, 0.0 }
 0x173   : > { %v2837_v53 = vsub.s32 2, %v2400_v58 }
 0x174   : > { %v1132_v21 = vrot.slane %v1131_v19, 4  ;;  %v1206_v18 = vrot.slane %v1205_v34, 4  ;;  %v1168_v60 = vadd.f32 %v1167_v2, %v1097_v11  ;;  %v1242_v44 = vadd.f32 %v1241_v43, %v1099_v14 }
 0x176   : > { %v1133_v7 = vadd.f32 %v1132_v21, %v1131_v19  ;;  %v1207_v41 = vadd.f32 %v1206_v18, %v1205_v34  ;;  %v1169_v61 = vrot.slane %v1168_v60, 4  ;;  %v1243_v50 = vrot.slane %v1242_v44, 4 }
 0x178   : > { %v1134_v8 = vrot.slane %v1133_v7, 2  ;;  %v1208_v23 = vrot.slane %v1207_v41, 2  ;;  %v1170_v36 = vadd.f32 %v1169_v61, %v1168_v60  ;;  %v1244_v24 = vadd.f32 %v1243_v50, %v1242_v44 }
 0x17a   : > { %v1135_v33 = vadd.f32 %v1134_v8, %v1133_v7  ;;  %v1209_v46 = vadd.f32 %v1208_v23, %v1207_v41  ;;  %v1171_v49 = vrot.slane %v1170_v36, 2  ;;  %v1245_v47 = vrot.slane %v1244_v24, 2 }
 0x17c   : > { %v1136_v6 = vrot.slane %v1135_v33, 1  ;;  %v1210_v12 = vrot.slane %v1209_v46, 1  ;;  %v1172_v17 = vadd.f32 %v1171_v49, %v1170_v36  ;;  %v1246_v37 = vadd.f32 %v1245_v47, %v1244_v24 }
 0x17e   : > { %v1173_v42 = vrot.slane %v1172_v17, 1  ;;  %v1247_v29 = vrot.slane %v1246_v37, 1  ;;  %v1137_v59 = vadd.f32 %v1136_v6, %v1135_v33  ;;  %v1211_v45 = vadd.f32 %v1210_v12, %v1209_v46 }
 0x180   : > { %v1174_v40 = vadd.f32 %v1173_v42, %v1172_v17  ;;  %v1248_v10 = vadd.f32 %v1247_v29, %v1246_v37 }
 0x182   : > { %v1253_v51 = vcombine.low %v1137_v59, %v1174_v40  ;;  %v1254_v54 = vcombine.low %v1211_v45, %v1248_v10 }
 0x184   : > { %v1261_v28 = vrot.slane %v1253_v51, %v1260_v30  ;;  %v1268_v35 = vrot.slane %v1254_v54, %v1260_v30 }
 0x186   : > { %v1269_v1 = vcombine.low %v1261_v28, %v1268_v35 }
 0x188   : > { %v1276_v15 = vrot.slane %v1269_v1, %v1260_v30 }
 0x18a   : > { %v1278_v16 = vadd.f32 %v1276_v15, %v1100_v39 }
 0x18c   : > { %1283 = vst.msk [vmem:[#allocation2] sm:$0xf] %vm2389_vm2, %v1278_v16 }
 0x193   : > { %v1287_v52 = vld [vmem:[#allocation2] sm:$0xf] }
 0x194   : > { %v1288_v22 = vmul.f32 0.00390625, %v1287_v52 }
 0x196   : > { %v1362_v3 = vrot.slane %v1288_v22, %v334_v4  ;;  %v1370_v9 = vrot.slane %v1288_v22, %v342_v5  ;;  %v1358_v0 = vrot.slane %v1288_v22, %v330_v63  ;;  %v1366_v31 = vrot.slane %v1288_v22, %v2837_v53  ;;  %v1353_v4 = vld [vmem:[%s2828_s4] sm:$0x1] }
 0x198   : > { %1439 = vmatprep.mubr.f32.mxu0 %v1362_v3  ;;  %1509 = vmatprep.mubr.f32.mxu1 %v1370_v9 }
 0x199   : > { %1440 = vmatmul.mubr.f32.vlgmr.msra.gmra.mxu0 %v1358_v0  ;;  %1510 = vmatmul.mubr.f32.vlgmr.msra.gmra.mxu1 %v1366_v31 }
 0x259   : > { %v1723_v55 = vpop.f32.mrf.mxu0  ;;  %v1758_v57 = vpop.f32.mrf.mxu1 }
 0x25b   : > { %v1724_v20 = vpop.f32.mrf.mxu0  ;;  %v1759_v5 = vpop.f32.mrf.mxu1 }
 0x25c   : > { %v1725_v48 = vadd.f32 %v1724_v20, %v1723_v55  ;;  %v1760_v63 = vadd.f32 %v1759_v5, %v1758_v57 }
 0x25e   : > { %v1442_v58 = vadd.f32 %v1725_v48, %v1353_v4 }
 0x260   : > { %v1512_v56 = vadd.f32 %v1760_v63, %v1442_v58 }
 0x262   : > { %1515 = vst [vmem:[%s254_s29] sm:$0x1] %v1512_v56 }
 0x263   : > { %1870 = shalt.err (!%p1867_p3)
}
 0x264   : > { %s1871_s14 = scalar_lea.hbm %s1527_s10, 16  ;;  %s1875_s17 = scalar_lea.hbm %s2829_s5, 32 }
 0x265   : > { %p1872_p5 = scmp.ne.s32.totalorder %s1527_s10, %s1871_s14  ;;  %p1876_p9 = scmp.lt.s32.totalorder %s1527_s10, %s2829_s5 }
 0x266   : > { %p1877_p12 = scmp.lt.s32.totalorder %s1875_s17, %s1871_s14 }
 0x267   : > { %p1873_p6 = pnand %p1872_p5, %p2015_p4 }
 0x268   : > { %p1878_p10 = por %p1877_p12, %p1876_p9 }
 0x269   : > { %p1874_p7 = pneg %p1873_p6 }
 0x26b   : > { %p1879_p11 = pnand %p1878_p10, %p1874_p7 }
 0x26d   : > { %1882 = shalt.err (!%p1879_p11)
}
 0x26e   : > { %1765 = dma.vmem_to_hbm [thread:$0]  (%p2015_p4), %s1530_s7, 16, %s1527_s10, %s1517_s11  }
 0x26f PF: > { %p1777_p13 = scmp.ge.s32.totalorder %s1937_s23, 2  ;;  %s1541_s29 = sand.u32 1, %s1917_s18  }
 0x270   : > { %s1542_s8 = scalar_lea.sflag [#allocation5], %s1541_s29 }
 0x271   : > { %p1772_p0 = pnand %p1777_p13, %p2022_p8 }
 0x273   : > { %p1773_p1 = pneg %p1772_p0 }
 0x275   : > { %1912 = dma.done.wait (%p1773_p1), %s1542_s8, 16  }
 0x276   : > { %1914 = vsyncadd (%p1773_p1), %s1542_s8, 4294967280  ;;  %s19_s23 = sadd.s32 1, %s1937_s23   ;;  %s2838_s18 = smov %s1921_s19 }
 0x277   : > { %p16_p2 = scmp.ge.s32.totalorder %s19_s23, 4   ;;  %s2839_s19 = smov %s1925_s20 }
 0x278   : > { %s2840_s20 = smov %s2028_s6  ;;  %s2841_s21 = smov %s1933_s22 }
 0x279   : > { %s2842_s22 = smov %s2844_s26  ;;  %18 = sbr.rel (!%p16_p2) target bundleno = 5 (0x5), region = 88 }
 0x27e   :  { %1546 = vsyncpa [#allocation4], 1 }
 0x27f   :  { %1548 = vsyncpa [#allocation4 + $0x1], 1 }
 0x280   :  { %1549 = vsyncpa [#allocation5], 1 }
 0x281   :  { %1551 = vsyncpa [#allocation5 + $0x1], 1 }

</bundles_post_ra>
